<compile_context>
chip_gen: v7x
topology: tpu7x:2x2x1
jax: 0.10.0
libtpu: 0.0.40
codegen_flags: <defaults>
</compile_context>

<pallas_src>
import numpy as np
import jax
import jax.numpy as jnp
from jax.experimental import pallas as pl
from jax.experimental.pallas import tpu as pltpu


# ----------------------------------------------------------------------------
# Exact PyTorch adaptive-avg-pool / bilinear(align_corners=True) matrices
# ----------------------------------------------------------------------------
def _pool_matrix(in_size, out_size):
    """1-D matrix reproducing torch AdaptiveAvgPool bin averaging exactly."""
    P = np.zeros((out_size, in_size), np.float32)
    for i in range(out_size):
        start = (i * in_size) // out_size
        end = -((-(i + 1) * in_size) // out_size)  # ceil((i+1)*in/out)
        P[i, start:end] = 1.0 / (end - start)
    return P


def _interp_matrix(out_size, in_size):
    """1-D bilinear interpolation matrix, torch align_corners=True semantics."""
    A = np.zeros((out_size, in_size), np.float32)
    if in_size == 1:
        A[:, 0] = 1.0
        return A
    scale = (in_size - 1) / (out_size - 1) if out_size > 1 else 0.0
    for h in range(out_size):
        pos = h * scale
        i0 = min(int(np.floor(pos)), in_size - 1)
        i1 = min(i0 + 1, in_size - 1)
        frac = pos - i0
        A[h, i0] += 1.0 - frac
        A[h, i1] += frac
    return A


def _fold_bn(gamma, beta, mean, var, eps=1e-5):
    scale = gamma / jnp.sqrt(var + eps)
    bias = beta - mean * scale
    return scale.reshape(1, -1), bias.reshape(1, -1)


def _round_up(x, m):
    return -(-x // m) * m


def _pick_tile(hw, *, mult, max_tile, prefer=()):
    """Largest divisor of hw <= max_tile that is a multiple of `mult`,
    preferring the alignments in `prefer` (tried in order)."""
    for m in tuple(prefer) + (mult,):
        t = min(max_tile, hw)
        t -= t % m
        while t >= m:
            if hw % t == 0:
                return t
            t -= m
    # TODO(synk): hw has no divisor aligned to `mult`; fall back to full-extent
    # blocks (correct, but large working set for big inputs).
    return hw


def _tpu_vmem_capacity_bytes(default=128 << 20):
    """Physical VMEM capacity (generation aware), with a safe fallback."""
    try:
        return int(pltpu.get_tpu_info().vmem_capacity_bytes)
    except Exception:
        return default


def _const_spec(block_shape, index_map):
    """BlockSpec for a grid-invariant operand: single-buffer it (halves its
    VMEM footprint, no pointless re-buffering).  Falls back to a default
    (double-buffered) spec if pipeline_mode is unavailable."""
    try:
        return pl.BlockSpec(block_shape, index_map, pipeline_mode=pl.Buffered(1))
    except Exception:
        return pl.BlockSpec(block_shape, index_map)


# ----------------------------------------------------------------------------
# Pallas kernels
# ----------------------------------------------------------------------------
def _make_pool_branch_kernel(num_levels, sizes, offs, s_used, s_pad, out_c_pad):
    """Pass 1: pooled branch -> already-bottlenecked tiny tensor y2_all.

    Grid = (N, HW // T1); the HW axis is a reduction accumulated into an
    (S_pad, C) f32 VMEM scratch so the image never has to be fully resident.
    """

    def kernel(x_ref, p_ref, w_ref, s_ref, b_ref, wl_ref, y2_ref, pooled_ref):
        k = pl.program_id(1)

        @pl.when(k == 0)
        def _():
            pooled_ref[...] = jnp.zeros(pooled_ref.shape, pooled_ref.dtype)

        # Partial adaptive-average-pool for this HW tile (all levels at once).
        pooled_ref[...] += jnp.dot(p_ref[...], x_ref[0],
                                   preferred_element_type=jnp.float32)

        @pl.when(k == pl.num_programs(1) - 1)
        def _():
            pooled = pooled_ref[...].astype(jnp.bfloat16)          # (S_pad, C)
            for l in range(num_levels):
                off, sz = int(offs[l]), int(sizes[l])
                # stage 1x1 conv + folded BatchNorm + ReLU (f32 affine)
                y = jnp.dot(pooled[off:off + sz, :], w_ref[l],
                            preferred_element_type=jnp.float32)    # (sz, Pc)
                y = jnp.maximum(y * s_ref[l] + b_ref[l], 0.0)
                # fold this level's slice of the bottleneck weight pre-upsample
                y2 = jnp.dot(y.astype(jnp.bfloat16), wl_ref[l],
                             preferred_element_type=jnp.float32)   # (sz, Pc)
                # direct slice store (sublane-aligned offsets), no concatenate
                y2_ref[0, off:off + sz, :] = y2.astype(y2_ref.dtype)
            if s_used < s_pad:
                # zero the lane-padding rows so pass 2 never multiplies
                # uninitialized VMEM (NaN * 0 hazard); exact: U cols are zero.
                y2_ref[0, s_used:s_pad, :] = jnp.zeros(
                    (s_pad - s_used, out_c_pad), y2_ref.dtype)

    return kernel


def _main_kernel(x_ref, u_ref, y2_ref, wx_ref, sb_ref, bb_ref, o_ref):
    """Pass 2: per-(image, HW-tile) bottleneck = x@Wb_x + U@y2, BN, ReLU."""
    acc = jnp.dot(x_ref[0], wx_ref[...],
                  preferred_element_type=jnp.float32)              # (T, Pc)
    acc = acc + jnp.dot(u_ref[...], y2_ref[0],
                        preferred_element_type=jnp.float32)        # (T, Pc)
    out = jnp.maximum(acc * sb_ref[...] + bb_ref[...], 0.0)
    o_ref[0] = out.astype(o_ref.dtype)        # bf16 store: halves HBM writes


# ----------------------------------------------------------------------------
# Parameters (deterministic, synthetic)
# ----------------------------------------------------------------------------
def init_params(key, channels, pooling_levels):
    out_c = channels // len(pooling_levels)
    c_tot = channels + out_c * len(pooling_levels)

    def nxt():
        nonlocal key
        key, sub = jax.random.split(key)
        return sub

    levels = []
    for _ in pooling_levels:
        w = jax.random.normal(nxt(), (channels, out_c), jnp.float32) / np.sqrt(channels)
        gamma = jax.random.uniform(nxt(), (out_c,), jnp.float32, 0.5, 1.5)
        beta = 0.1 * jax.random.normal(nxt(), (out_c,), jnp.float32)
        mean = 0.1 * jax.random.normal(nxt(), (out_c,), jnp.float32)
        var = jax.random.uniform(nxt(), (out_c,), jnp.float32, 0.5, 1.5)
        s, b = _fold_bn(gamma, beta, mean, var)
        levels.append({"w": w, "scale": s, "bias": b})

    wb = jax.random.normal(nxt(), (c_tot, out_c), jnp.float32) / np.sqrt(c_tot)
    gamma = jax.random.uniform(nxt(), (out_c,), jnp.float32, 0.5, 1.5)
    beta = 0.1 * jax.random.normal(nxt(), (out_c,), jnp.float32)
    mean = 0.1 * jax.random.normal(nxt(), (out_c,), jnp.float32)
    var = jax.random.uniform(nxt(), (out_c,), jnp.float32, 0.5, 1.5)
    sb, bb = _fold_bn(gamma, beta, mean, var)

    return {"levels": levels, "wb": wb, "scale_b": sb, "bias_b": bb, "out_c": out_c}


# ----------------------------------------------------------------------------
# Wrapper: build constants once, return a jitted forward
# ----------------------------------------------------------------------------
def make_pyramid_pooling_fn(params, pooling_levels, H, W):
    C = int(np.asarray(params["levels"][0]["w"]).shape[0])
    out_c = params["out_c"]
    num_levels = len(pooling_levels)
    HW = H * W
    out_c_pad = _round_up(out_c, 128)                 # lane-dense output
    bf16 = jnp.bfloat16

    # Per-level row blocks (padded to 8), total padded to a multiple of 128.
    sizes = [_round_up(lvl * lvl, 8) for lvl in pooling_levels]
    offs = np.concatenate([[0], np.cumsum(sizes)])
    S_used = int(offs[-1])
    S_pad = _round_up(S_used, 128)

    P_all = np.zeros((S_pad, HW), np.float32)         # stacked adaptive pools
    U_all = np.zeros((HW, S_pad), np.float32)         # stacked bilinear upsamples
    for lvl, off in zip(pooling_levels, offs[:-1]):
        P_all[off:off + lvl * lvl, :] = np.kron(_pool_matrix(H, lvl), _pool_matrix(W, lvl))
        U_all[:, off:off + lvl * lvl] = np.kron(_interp_matrix(H, lvl), _interp_matrix(W, lvl))

    def pad_cols(a, n):
        a = np.asarray(a, np.float32)
        return np.pad(a, ((0, 0), (0, n - a.shape[1])))

    # Stage weights / folded BN (stacked, zero-padded to out_c_pad lanes).
    w_stk = np.stack([pad_cols(lp["w"], out_c_pad) for lp in params["levels"]])      # (L, C, Pc)
    s_stk = np.stack([pad_cols(lp["scale"], out_c_pad) for lp in params["levels"]])  # (L, 1, Pc)
    b_stk = np.stack([pad_cols(lp["bias"], out_c_pad) for lp in params["levels"]])   # (L, 1, Pc)

    # Bottleneck weight split: x-part and per-level parts (folded pre-upsample).
    wb = np.asarray(params["wb"], np.float32)
    wx = pad_cols(wb[:C], out_c_pad)                                                  # (C, Pc)
    wl_stk = np.stack([
        np.pad(pad_cols(wb[C + l * out_c: C + (l + 1) * out_c], out_c_pad),
               ((0, out_c_pad - out_c), (0, 0)))
        for l in range(num_levels)])                                                  # (L, Pc, Pc)
    sb = pad_cols(params["scale_b"], out_c_pad)                                       # (1, Pc)
    bb = pad_cols(params["bias_b"], out_c_pad)                                        # (1, Pc)

    # Device constants, cast once (hoisted out of the per-call path).
    P_all_d = jnp.asarray(P_all, bf16)
    U_all_d = jnp.asarray(U_all, bf16)
    w_stk_d = jnp.asarray(w_stk, bf16)
    s_stk_d = jnp.asarray(s_stk)
    b_stk_d = jnp.asarray(b_stk)
    wl_stk_d = jnp.asarray(wl_stk, bf16)
    wx_d = jnp.asarray(wx, bf16)
    sb_d = jnp.asarray(sb)
    bb_d = jnp.asarray(bb)

    # Generation-aware VMEM budget and tile sizes.
    vmem_cap = _tpu_vmem_capacity_bytes()
    vmem_limit = int(min(96 << 20, max(32 << 20, vmem_cap - (24 << 20))))
    big_vmem = vmem_cap >= (96 << 20)                 # v5e / v6e (128 MiB physical)
    # Pass-1 HW tile: it is the lane dim of the P block -> multiple of 128.
    T1 = _pick_tile(HW, mult=128, max_tile=1024 if big_vmem else 512, prefer=(256,))
    # Pass-2 HW tile: sublane dim only; prefer MXU-friendly 256/128 multiples.
    T2 = _pick_tile(HW, mult=8, max_tile=2048 if big_vmem else 1024, prefer=(256, 128))

    cp1 = pltpu.CompilerParams(dimension_semantics=("parallel", "arbitrary"),
                               vmem_limit_bytes=vmem_limit)
    cp2 = pltpu.CompilerParams(dimension_semantics=("parallel", "parallel"),
                               vmem_limit_bytes=vmem_limit)

    pool_kernel = _make_pool_branch_kernel(num_levels, sizes, offs,
                                           S_used, S_pad, out_c_pad)

    @jax.jit
    def forward(x_nchw):
        N = x_nchw.shape[0]
        x_flat = jnp.transpose(x_nchw, (0, 2, 3, 1)).reshape(N, HW, C).astype(bf16)

        # Advisory cost so XLA schedules around the small pooled pass.
        flops1 = (2 * N * S_pad * HW * C
                  + 2 * N * sum(int(sz) * (C + out_c_pad) * out_c_pad for sz in sizes))
        bytes1 = (N * (HW * C + S_pad * out_c_pad) * 2
                  + (S_pad * HW + num_levels * (C + out_c_pad + 2) * out_c_pad) * 2)
        cost1 = pl.CostEstimate(flops=int(flops1), transcendentals=0,
                                bytes_accessed=int(bytes1))

        # ------------- Pass 1: pooled branch (tiny per-image tensor) ----------
        y2_all = pl.pallas_call(
            pool_kernel,
            out_shape=jax.ShapeDtypeStruct((N, S_pad, out_c_pad), bf16),
            grid=(N, HW // T1),
            in_specs=[
                pl.BlockSpec((1, T1, C), lambda n, k: (n, k, 0)),
                pl.BlockSpec((S_pad, T1), lambda n, k: (0, k)),
                _const_spec((num_levels, C, out_c_pad), lambda n, k: (0, 0, 0)),
                _const_spec((num_levels, 1, out_c_pad), lambda n, k: (0, 0, 0)),
                _const_spec((num_levels, 1, out_c_pad), lambda n, k: (0, 0, 0)),
                _const_spec((num_levels, out_c_pad, out_c_pad), lambda n, k: (0, 0, 0)),
            ],
            out_specs=pl.BlockSpec((1, S_pad, out_c_pad), lambda n, k: (n, 0, 0)),
            scratch_shapes=[pltpu.VMEM((S_pad, C), jnp.float32)],
            compiler_params=cp1,
            cost_estimate=cost1,
        )(x_flat, P_all_d, w_stk_d, s_stk_d, b_stk_d, wl_stk_d)

        # ------------- Pass 2: main bottleneck, HW-tiled, bf16 output ---------
        out_pad = pl.pallas_call(
            _main_kernel,
            out_shape=jax.ShapeDtypeStruct((N, HW, out_c_pad), bf16),
            grid=(N, HW // T2),
            in_specs=[
                pl.BlockSpec((1, T2, C), lambda n, t: (n, t, 0)),
                pl.BlockSpec((T2, S_pad), lambda n, t: (t, 0)),
                pl.BlockSpec((1, S_pad, out_c_pad), lambda n, t: (n, 0, 0)),
                _const_spec((C, out_c_pad), lambda n, t: (0, 0)),
                _const_spec((1, out_c_pad), lambda n, t: (0, 0)),
                _const_spec((1, out_c_pad), lambda n, t: (0, 0)),
            ],
            out_specs=pl.BlockSpec((1, T2, out_c_pad), lambda n, t: (n, t, 0)),
            compiler_params=cp2,
        )(x_flat, U_all_d, y2_all, wx_d, sb_d, bb_d)

        out = out_pad[..., :out_c]                    # strip lane padding (exact zeros)
        out = jnp.transpose(out.reshape(N, H, W, out_c), (0, 3, 1, 2))
        return out.astype(jnp.float32)                # module-facing dtype

    return forward


# ----------------------------------------------------------------------------
# Pure-JAX reference (same math + same bf16 casts, no Pallas) for validation
# ----------------------------------------------------------------------------
def pyramid_pooling_reference(x_nchw, params, pooling_levels):
    N, C, H, W = x_nchw.shape
    out_c = params["out_c"]
    bf16 = jnp.bfloat16
    x_flat = jnp.transpose(x_nchw, (0, 2, 3, 1)).reshape(N, H * W, C).astype(bf16)
    wb = params["wb"]
    acc = jnp.einsum("nmc,co->nmo", x_flat, wb[:C].astype(bf16),
                     preferred_element_type=jnp.float32)
    for l, (lvl, lp) in enumerate(zip(pooling_levels, params["levels"])):
        P = jnp.asarray(np.kron(_pool_matrix(H, lvl), _pool_matrix(W, lvl))).astype(bf16)
        U = jnp.asarray(np.kron(_interp_matrix(H, lvl), _interp_matrix(W, lvl))).astype(bf16)
        pooled = jnp.einsum("pm,nmc->npc", P, x_flat,
                            preferred_element_type=jnp.float32).astype(bf16)
        y = jnp.einsum("npc,co->npo", pooled, lp["w"].astype(bf16),
                       preferred_element_type=jnp.float32)
        y = jnp.maximum(y * lp["scale"] + lp["bias"], 0.0).astype(bf16)
        wl = wb[C + l * out_c: C + (l + 1) * out_c].astype(bf16)
        y2 = jnp.einsum("npo,ok->npk", y, wl,
                        preferred_element_type=jnp.float32).astype(bf16)
        acc = acc + jnp.einsum("mp,npk->nmk", U, y2,
                               preferred_element_type=jnp.float32)
    out = jnp.maximum(acc * params["scale_b"] + params["bias_b"], 0.0)
    return jnp.transpose(out.reshape(N, H, W, out_c), (0, 3, 1, 2))


if __name__ == "__main__":
    N, C, H, W = 2, 8, 16, 16
    pooling_levels = (1, 2, 3, 6)          # classic PSPNet levels; out_c = 8 // 4 = 2

    key = jax.random.PRNGKey(0)
    kx, kp = jax.random.split(key)
    x = jax.random.normal(kx, (N, C, H, W), jnp.float32)
    params = init_params(kp, C, pooling_levels)

    forward = make_pyramid_pooling_fn(params, pooling_levels, H, W)
    out = jax.block_until_ready(forward(x))

    ref = pyramid_pooling_reference(x, params, pooling_levels)
    np.testing.assert_allclose(np.asarray(out, np.float32), np.asarray(ref, np.float32),
                               rtol=2e-2, atol=5e-3)
    assert out.shape == (N, params["out_c"], H, W)
    print("KERNEL_OK")
</pallas_src>

<mosaic_0001>
module attributes {stable_mosaic.version = 11 : i64} {
  func.func @kernel(%arg0: i32, %arg1: i32, %arg2: memref<1x256x8xbf16, #tpu.memory_space<vmem>>, %arg3: memref<128x256xbf16, #tpu.memory_space<vmem>>, %arg4: memref<4x8x128xbf16, #tpu.memory_space<vmem>>, %arg5: memref<4x1x128xf32, #tpu.memory_space<vmem>>, %arg6: memref<4x1x128xf32, #tpu.memory_space<vmem>>, %arg7: memref<4x128x128xbf16, #tpu.memory_space<vmem>>, %arg8: memref<1x128x128xbf16, #tpu.memory_space<vmem>>, %arg9: memref<128x8xf32, #tpu.memory_space<vmem>>) attributes {dimension_semantics = [#tpu.dimension_semantics<parallel>, #tpu.dimension_semantics<arbitrary>], iteration_bounds = array<i64: 2, 1>, scalar_prefetch = 0 : i64, scratch_operands = 1 : i64, tpu.core_type = #tpu.core_type<tc>, window_params = [{transform_indices = @transform_0, window_bounds = array<i64: 1, 256, 8>}, {transform_indices = @transform_1, window_bounds = array<i64: 128, 256>}, {pipeline_mode = #tpu.pipeline_mode<synchronous>, transform_indices = @transform_2, window_bounds = array<i64: 4, 8, 128>}, {pipeline_mode = #tpu.pipeline_mode<synchronous>, transform_indices = @transform_3, window_bounds = array<i64: 4, 1, 128>}, {pipeline_mode = #tpu.pipeline_mode<synchronous>, transform_indices = @transform_4, window_bounds = array<i64: 4, 1, 128>}, {pipeline_mode = #tpu.pipeline_mode<synchronous>, transform_indices = @transform_5, window_bounds = array<i64: 4, 128, 128>}, {transform_indices = @transform_6, window_bounds = array<i64: 1, 128, 128>}]} {
    %c0_i32 = arith.constant 0 : i32
    %0 = arith.cmpi eq, %arg1, %c0_i32 : i32
    %1 = arith.extui %0 : i1 to i32
    %c0_i32_0 = arith.constant 0 : i32
    %2 = arith.cmpi ne, %1, %c0_i32_0 : i32
    scf.if %2 {
      %cst_11 = arith.constant 0.000000e+00 : f32
      %13 = vector.broadcast %cst_11 : f32 to vector<128x8xf32>
      %c0_12 = arith.constant 0 : index
      %c0_13 = arith.constant 0 : index
      %14 = vector.load %arg9[%c0_12, %c0_13] : memref<128x8xf32, #tpu.memory_space<vmem>>, vector<128x8xf32>
      tpu.vector_store %arg9[%c0_12, %c0_13], %13 {strides = array<i32>} : memref<128x8xf32, #tpu.memory_space<vmem>>, vector<128x8xf32>,
    } else {
    }
    %c0 = arith.constant 0 : index
    %c0_1 = arith.constant 0 : index
    %3 = vector.load %arg9[%c0, %c0_1] : memref<128x8xf32, #tpu.memory_space<vmem>>, vector<128x8xf32>
    %c0_2 = arith.constant 0 : index
    %c0_3 = arith.constant 0 : index
    %4 = vector.load %arg3[%c0_2, %c0_3] : memref<128x256xbf16, #tpu.memory_space<vmem>>, vector<128x256xbf16>
    %c0_4 = arith.constant 0 : index
    %c0_5 = arith.constant 0 : index
    %c0_6 = arith.constant 0 : index
    %5 = vector.load %arg2[%c0_4, %c0_5, %c0_6] : memref<1x256x8xbf16, #tpu.memory_space<vmem>>, vector<1x256x8xbf16>
    %6 = vector.shape_cast %5 : vector<1x256x8xbf16> to vector<256x8xbf16>
    %cst = arith.constant dense<0.000000e+00> : vector<128x8xf32>
    %7 = tpu.matmul %4, %6, %cst {dimension_numbers = #tpu.dot_dimension_numbers<[1], [0], [0], [1], [0, 0, 1, 1], [], []>} : vector<128x256xbf16>, vector<256x8xbf16>, vector<128x8xf32> -> vector<128x8xf32>
    %8 = arith.addf %3, %7 : vector<128x8xf32>
    %c0_7 = arith.constant 0 : index
    %c0_8 = arith.constant 0 : index
    %9 = vector.load %arg9[%c0_7, %c0_8] : memref<128x8xf32, #tpu.memory_space<vmem>>, vector<128x8xf32>
    tpu.vector_store %arg9[%c0_7, %c0_8], %8 {strides = array<i32>} : memref<128x8xf32, #tpu.memory_space<vmem>>, vector<128x8xf32>,
    %c0_i32_9 = arith.constant 0 : i32
    %10 = arith.cmpi eq, %arg1, %c0_i32_9 : i32
    %11 = arith.extui %10 : i1 to i32
    %c0_i32_10 = arith.constant 0 : i32
    %12 = arith.cmpi ne, %11, %c0_i32_10 : i32
    scf.if %12 {
      %c0_11 = arith.constant 0 : index
      %c0_12 = arith.constant 0 : index
      %13 = vector.load %arg9[%c0_11, %c0_12] : memref<128x8xf32, #tpu.memory_space<vmem>>, vector<128x8xf32>
      %14 = arith.truncf %13 : vector<128x8xf32> to vector<128x8xbf16>
      %15 = vector.extract_strided_slice %14 {offsets = [0, 0], sizes = [8, 8], strides = [1, 1]} : vector<128x8xbf16> to vector<8x8xbf16>
      %c0_13 = arith.constant 0 : index
      %c0_14 = arith.constant 0 : index
      %c0_15 = arith.constant 0 : index
      %16 = vector.load %arg4[%c0_13, %c0_14, %c0_15] : memref<4x8x128xbf16, #tpu.memory_space<vmem>>, vector<1x8x128xbf16>
      %17 = vector.shape_cast %16 : vector<1x8x128xbf16> to vector<8x128xbf16>
      %cst_16 = arith.constant dense<0.000000e+00> : vector<8x128xf32>
      %18 = tpu.matmul %15, %17, %cst_16 {dimension_numbers = #tpu.dot_dimension_numbers<[1], [0], [0], [1], [0, 0, 1, 1], [], []>} : vector<8x8xbf16>, vector<8x128xbf16>, vector<8x128xf32> -> vector<8x128xf32>
      %c0_17 = arith.constant 0 : index
      %c0_18 = arith.constant 0 : index
      %c0_19 = arith.constant 0 : index
      %19 = vector.load %arg5[%c0_17, %c0_18, %c0_19] : memref<4x1x128xf32, #tpu.memory_space<vmem>>, vector<1x1x128xf32>
      %20 = vector.shape_cast %19 : vector<1x1x128xf32> to vector<1x128xf32>
      %21 = vector.broadcast %20 : vector<1x128xf32> to vector<8x128xf32>
      %22 = arith.mulf %18, %21 : vector<8x128xf32>
      %c0_20 = arith.constant 0 : index
      %c0_21 = arith.constant 0 : index
      %c0_22 = arith.constant 0 : index
      %23 = vector.load %arg6[%c0_20, %c0_21, %c0_22] : memref<4x1x128xf32, #tpu.memory_space<vmem>>, vector<1x1x128xf32>
      %24 = vector.shape_cast %23 : vector<1x1x128xf32> to vector<1x128xf32>
      %25 = vector.broadcast %24 : vector<1x128xf32> to vector<8x128xf32>
      %26 = arith.addf %22, %25 : vector<8x128xf32>
      %cst_23 = arith.constant 0.000000e+00 : f32
      %27 = vector.broadcast %cst_23 : f32 to vector<8x128xf32>
      %28 = arith.maximumf %26, %27 : vector<8x128xf32>
      %29 = arith.truncf %28 : vector<8x128xf32> to vector<8x128xbf16>
      %c0_24 = arith.constant 0 : index
      %c0_25 = arith.constant 0 : index
      %c0_26 = arith.constant 0 : index
      %30 = vector.load %arg7[%c0_24, %c0_25, %c0_26] : memref<4x128x128xbf16, #tpu.memory_space<vmem>>, vector<1x128x128xbf16>
      %31 = vector.shape_cast %30 : vector<1x128x128xbf16> to vector<128x128xbf16>
      %cst_27 = arith.constant dense<0.000000e+00> : vector<8x128xf32>
      %32 = tpu.matmul %29, %31, %cst_27 {dimension_numbers = #tpu.dot_dimension_numbers<[1], [0], [0], [1], [0, 0, 1, 1], [], []>} : vector<8x128xbf16>, vector<128x128xbf16>, vector<8x128xf32> -> vector<8x128xf32>
      %33 = arith.truncf %32 : vector<8x128xf32> to vector<8x128xbf16>
      %c0_28 = arith.constant 0 : index
      %c0_29 = arith.constant 0 : index
      %c0_30 = arith.constant 0 : index
      %34 = vector.load %arg8[%c0_28, %c0_29, %c0_30] : memref<1x128x128xbf16, #tpu.memory_space<vmem>>, vector<1x8x128xbf16>
      %35 = vector.shape_cast %34 : vector<1x8x128xbf16> to vector<8x128xbf16>
      %36 = vector.shape_cast %33 : vector<8x128xbf16> to vector<1x8x128xbf16>
      tpu.vector_store %arg8[%c0_28, %c0_29, %c0_30], %36 {strides = array<i32>} : memref<1x128x128xbf16, #tpu.memory_space<vmem>>, vector<1x8x128xbf16>,
      %37 = vector.extract_strided_slice %14 {offsets = [8, 0], sizes = [8, 8], strides = [1, 1]} : vector<128x8xbf16> to vector<8x8xbf16>
      %c1 = arith.constant 1 : index
      %c0_31 = arith.constant 0 : index
      %c0_32 = arith.constant 0 : index
      %38 = vector.load %arg4[%c1, %c0_31, %c0_32] : memref<4x8x128xbf16, #tpu.memory_space<vmem>>, vector<1x8x128xbf16>
      %39 = vector.shape_cast %38 : vector<1x8x128xbf16> to vector<8x128xbf16>
      %cst_33 = arith.constant dense<0.000000e+00> : vector<8x128xf32>
      %40 = tpu.matmul %37, %39, %cst_33 {dimension_numbers = #tpu.dot_dimension_numbers<[1], [0], [0], [1], [0, 0, 1, 1], [], []>} : vector<8x8xbf16>, vector<8x128xbf16>, vector<8x128xf32> -> vector<8x128xf32>
      %c1_34 = arith.constant 1 : index
      %c0_35 = arith.constant 0 : index
      %c0_36 = arith.constant 0 : index
      %41 = vector.load %arg5[%c1_34, %c0_35, %c0_36] : memref<4x1x128xf32, #tpu.memory_space<vmem>>, vector<1x1x128xf32>
      %42 = vector.shape_cast %41 : vector<1x1x128xf32> to vector<1x128xf32>
      %43 = vector.broadcast %42 : vector<1x128xf32> to vector<8x128xf32>
      %44 = arith.mulf %40, %43 : vector<8x128xf32>
      %c1_37 = arith.constant 1 : index
      %c0_38 = arith.constant 0 : index
      %c0_39 = arith.constant 0 : index
      %45 = vector.load %arg6[%c1_37, %c0_38, %c0_39] : memref<4x1x128xf32, #tpu.memory_space<vmem>>, vector<1x1x128xf32>
      %46 = vector.shape_cast %45 : vector<1x1x128xf32> to vector<1x128xf32>
      %47 = vector.broadcast %46 : vector<1x128xf32> to vector<8x128xf32>
      %48 = arith.addf %44, %47 : vector<8x128xf32>
      %cst_40 = arith.constant 0.000000e+00 : f32
      %49 = vector.broadcast %cst_40 : f32 to vector<8x128xf32>
      %50 = arith.maximumf %48, %49 : vector<8x128xf32>
      %51 = arith.truncf %50 : vector<8x128xf32> to vector<8x128xbf16>
      %c1_41 = arith.constant 1 : index
      %c0_42 = arith.constant 0 : index
      %c0_43 = arith.constant 0 : index
      %52 = vector.load %arg7[%c1_41, %c0_42, %c0_43] : memref<4x128x128xbf16, #tpu.memory_space<vmem>>, vector<1x128x128xbf16>
      %53 = vector.shape_cast %52 : vector<1x128x128xbf16> to vector<128x128xbf16>
      %cst_44 = arith.constant dense<0.000000e+00> : vector<8x128xf32>
      %54 = tpu.matmul %51, %53, %cst_44 {dimension_numbers = #tpu.dot_dimension_numbers<[1], [0], [0], [1], [0, 0, 1, 1], [], []>} : vector<8x128xbf16>, vector<128x128xbf16>, vector<8x128xf32> -> vector<8x128xf32>
      %55 = arith.truncf %54 : vector<8x128xf32> to vector<8x128xbf16>
      %c0_45 = arith.constant 0 : index
      %c8 = arith.constant 8 : index
      %c0_46 = arith.constant 0 : index
      %56 = vector.load %arg8[%c0_45, %c8, %c0_46] : memref<1x128x128xbf16, #tpu.memory_space<vmem>>, vector<1x8x128xbf16>
      %57 = vector.shape_cast %56 : vector<1x8x128xbf16> to vector<8x128xbf16>
      %58 = vector.shape_cast %55 : vector<8x128xbf16> to vector<1x8x128xbf16>
      tpu.vector_store %arg8[%c0_45, %c8, %c0_46], %58 {strides = array<i32>} : memref<1x128x128xbf16, #tpu.memory_space<vmem>>, vector<1x8x128xbf16>,
      %59 = vector.extract_strided_slice %14 {offsets = [16, 0], sizes = [16, 8], strides = [1, 1]} : vector<128x8xbf16> to vector<16x8xbf16>
      %c2 = arith.constant 2 : index
      %c0_47 = arith.constant 0 : index
      %c0_48 = arith.constant 0 : index
      %60 = vector.load %arg4[%c2, %c0_47, %c0_48] : memref<4x8x128xbf16, #tpu.memory_space<vmem>>, vector<1x8x128xbf16>
      %61 = vector.shape_cast %60 : vector<1x8x128xbf16> to vector<8x128xbf16>
      %cst_49 = arith.constant dense<0.000000e+00> : vector<16x128xf32>
      %62 = tpu.matmul %59, %61, %cst_49 {dimension_numbers = #tpu.dot_dimension_numbers<[1], [0], [0], [1], [0, 0, 1, 1], [], []>} : vector<16x8xbf16>, vector<8x128xbf16>, vector<16x128xf32> -> vector<16x128xf32>
      %c2_50 = arith.constant 2 : index
      %c0_51 = arith.constant 0 : index
      %c0_52 = arith.constant 0 : index
      %63 = vector.load %arg5[%c2_50, %c0_51, %c0_52] : memref<4x1x128xf32, #tpu.memory_space<vmem>>, vector<1x1x128xf32>
      %64 = vector.shape_cast %63 : vector<1x1x128xf32> to vector<1x128xf32>
      %65 = vector.broadcast %64 : vector<1x128xf32> to vector<16x128xf32>
      %66 = arith.mulf %62, %65 : vector<16x128xf32>
      %c2_53 = arith.constant 2 : index
      %c0_54 = arith.constant 0 : index
      %c0_55 = arith.constant 0 : index
      %67 = vector.load %arg6[%c2_53, %c0_54, %c0_55] : memref<4x1x128xf32, #tpu.memory_space<vmem>>, vector<1x1x128xf32>
      %68 = vector.shape_cast %67 : vector<1x1x128xf32> to vector<1x128xf32>
      %69 = vector.broadcast %68 : vector<1x128xf32> to vector<16x128xf32>
      %70 = arith.addf %66, %69 : vector<16x128xf32>
      %cst_56 = arith.constant 0.000000e+00 : f32
      %71 = vector.broadcast %cst_56 : f32 to vector<16x128xf32>
      %72 = arith.maximumf %70, %71 : vector<16x128xf32>
      %73 = arith.truncf %72 : vector<16x128xf32> to vector<16x128xbf16>
      %c2_57 = arith.constant 2 : index
      %c0_58 = arith.constant 0 : index
      %c0_59 = arith.constant 0 : index
      %74 = vector.load %arg7[%c2_57, %c0_58, %c0_59] : memref<4x128x128xbf16, #tpu.memory_space<vmem>>, vector<1x128x128xbf16>
      %75 = vector.shape_cast %74 : vector<1x128x128xbf16> to vector<128x128xbf16>
      %cst_60 = arith.constant dense<0.000000e+00> : vector<16x128xf32>
      %76 = tpu.matmul %73, %75, %cst_60 {dimension_numbers = #tpu.dot_dimension_numbers<[1], [0], [0], [1], [0, 0, 1, 1], [], []>} : vector<16x128xbf16>, vector<128x128xbf16>, vector<16x128xf32> -> vector<16x128xf32>
      %77 = arith.truncf %76 : vector<16x128xf32> to vector<16x128xbf16>
      %c0_61 = arith.constant 0 : index
      %c16 = arith.constant 16 : index
      %c0_62 = arith.constant 0 : index
      %78 = vector.load %arg8[%c0_61, %c16, %c0_62] : memref<1x128x128xbf16, #tpu.memory_space<vmem>>, vector<1x16x128xbf16>
      %79 = vector.shape_cast %78 : vector<1x16x128xbf16> to vector<16x128xbf16>
      %80 = vector.shape_cast %77 : vector<16x128xbf16> to vector<1x16x128xbf16>
      tpu.vector_store %arg8[%c0_61, %c16, %c0_62], %80 {strides = array<i32>} : memref<1x128x128xbf16, #tpu.memory_space<vmem>>, vector<1x16x128xbf16>,
      %81 = vector.extract_strided_slice %14 {offsets = [32, 0], sizes = [40, 8], strides = [1, 1]} : vector<128x8xbf16> to vector<40x8xbf16>
      %c3 = arith.constant 3 : index
      %c0_63 = arith.constant 0 : index
      %c0_64 = arith.constant 0 : index
      %82 = vector.load %arg4[%c3, %c0_63, %c0_64] : memref<4x8x128xbf16, #tpu.memory_space<vmem>>, vector<1x8x128xbf16>
      %83 = vector.shape_cast %82 : vector<1x8x128xbf16> to vector<8x128xbf16>
      %cst_65 = arith.constant dense<0.000000e+00> : vector<40x128xf32>
      %84 = tpu.matmul %81, %83, %cst_65 {dimension_numbers = #tpu.dot_dimension_numbers<[1], [0], [0], [1], [0, 0, 1, 1], [], []>} : vector<40x8xbf16>, vector<8x128xbf16>, vector<40x128xf32> -> vector<40x128xf32>
      %c3_66 = arith.constant 3 : index
      %c0_67 = arith.constant 0 : index
      %c0_68 = arith.constant 0 : index
      %85 = vector.load %arg5[%c3_66, %c0_67, %c0_68] : memref<4x1x128xf32, #tpu.memory_space<vmem>>, vector<1x1x128xf32>
      %86 = vector.shape_cast %85 : vector<1x1x128xf32> to vector<1x128xf32>
      %87 = vector.broadcast %86 : vector<1x128xf32> to vector<40x128xf32>
      %88 = arith.mulf %84, %87 : vector<40x128xf32>
      %c3_69 = arith.constant 3 : index
      %c0_70 = arith.constant 0 : index
      %c0_71 = arith.constant 0 : index
      %89 = vector.load %arg6[%c3_69, %c0_70, %c0_71] : memref<4x1x128xf32, #tpu.memory_space<vmem>>, vector<1x1x128xf32>
      %90 = vector.shape_cast %89 : vector<1x1x128xf32> to vector<1x128xf32>
      %91 = vector.broadcast %90 : vector<1x128xf32> to vector<40x128xf32>
      %92 = arith.addf %88, %91 : vector<40x128xf32>
      %cst_72 = arith.constant 0.000000e+00 : f32
      %93 = vector.broadcast %cst_72 : f32 to vector<40x128xf32>
      %94 = arith.maximumf %92, %93 : vector<40x128xf32>
      %95 = arith.truncf %94 : vector<40x128xf32> to vector<40x128xbf16>
      %c3_73 = arith.constant 3 : index
      %c0_74 = arith.constant 0 : index
      %c0_75 = arith.constant 0 : index
      %96 = vector.load %arg7[%c3_73, %c0_74, %c0_75] : memref<4x128x128xbf16, #tpu.memory_space<vmem>>, vector<1x128x128xbf16>
      %97 = vector.shape_cast %96 : vector<1x128x128xbf16> to vector<128x128xbf16>
      %cst_76 = arith.constant dense<0.000000e+00> : vector<40x128xf32>
      %98 = tpu.matmul %95, %97, %cst_76 {dimension_numbers = #tpu.dot_dimension_numbers<[1], [0], [0], [1], [0, 0, 1, 1], [], []>} : vector<40x128xbf16>, vector<128x128xbf16>, vector<40x128xf32> -> vector<40x128xf32>
      %99 = arith.truncf %98 : vector<40x128xf32> to vector<40x128xbf16>
      %c0_77 = arith.constant 0 : index
      %c32 = arith.constant 32 : index
      %c0_78 = arith.constant 0 : index
      %100 = vector.load %arg8[%c0_77, %c32, %c0_78] : memref<1x128x128xbf16, #tpu.memory_space<vmem>>, vector<1x40x128xbf16>
      %101 = vector.shape_cast %100 : vector<1x40x128xbf16> to vector<40x128xbf16>
      %102 = vector.shape_cast %99 : vector<40x128xbf16> to vector<1x40x128xbf16>
      tpu.vector_store %arg8[%c0_77, %c32, %c0_78], %102 {strides = array<i32>} : memref<1x128x128xbf16, #tpu.memory_space<vmem>>, vector<1x40x128xbf16>,
      %cst_79 = arith.constant 0.000000e+00 : bf16
      %103 = vector.broadcast %cst_79 : bf16 to vector<56x128xbf16>
      %c0_80 = arith.constant 0 : index
      %c72 = arith.constant 72 : index
      %c0_81 = arith.constant 0 : index
      %104 = vector.load %arg8[%c0_80, %c72, %c0_81] : memref<1x128x128xbf16, #tpu.memory_space<vmem>>, vector<1x56x128xbf16>
      %105 = vector.shape_cast %104 : vector<1x56x128xbf16> to vector<56x128xbf16>
      %106 = vector.shape_cast %103 : vector<56x128xbf16> to vector<1x56x128xbf16>
      tpu.vector_store %arg8[%c0_80, %c72, %c0_81], %106 {strides = array<i32>} : memref<1x128x128xbf16, #tpu.memory_space<vmem>>, vector<1x56x128xbf16>,
    } else {
    }
    return
  }
  func.func @transform_0(%arg0: i32, %arg1: i32) -> (i32, i32, i32) {
    %c0_i32 = arith.constant 0 : i32
    %c0_i32_0 = arith.constant 0 : i32
    return %arg0, %arg1, %c0_i32 : i32, i32, i32
  }
  func.func @transform_1(%arg0: i32, %arg1: i32) -> (i32, i32) {
    %c0_i32 = arith.constant 0 : i32
    %c0_i32_0 = arith.constant 0 : i32
    return %c0_i32, %arg1 : i32, i32
  }
  func.func @transform_2(%arg0: i32, %arg1: i32) -> (i32, i32, i32) {
    %c0_i32 = arith.constant 0 : i32
    %c0_i32_0 = arith.constant 0 : i32
    %c0_i32_1 = arith.constant 0 : i32
    %c0_i32_2 = arith.constant 0 : i32
    return %c0_i32, %c0_i32_0, %c0_i32_1 : i32, i32, i32
  }
  func.func @transform_3(%arg0: i32, %arg1: i32) -> (i32, i32, i32) {
    %c0_i32 = arith.constant 0 : i32
    %c0_i32_0 = arith.constant 0 : i32
    %c0_i32_1 = arith.constant 0 : i32
    %c0_i32_2 = arith.constant 0 : i32
    return %c0_i32, %c0_i32_0, %c0_i32_1 : i32, i32, i32
  }
  func.func @transform_4(%arg0: i32, %arg1: i32) -> (i32, i32, i32) {
    %c0_i32 = arith.constant 0 : i32
    %c0_i32_0 = arith.constant 0 : i32
    %c0_i32_1 = arith.constant 0 : i32
    %c0_i32_2 = arith.constant 0 : i32
    return %c0_i32, %c0_i32_0, %c0_i32_1 : i32, i32, i32
  }
  func.func @transform_5(%arg0: i32, %arg1: i32) -> (i32, i32, i32) {
    %c0_i32 = arith.constant 0 : i32
    %c0_i32_0 = arith.constant 0 : i32
    %c0_i32_1 = arith.constant 0 : i32
    %c0_i32_2 = arith.constant 0 : i32
    return %c0_i32, %c0_i32_0, %c0_i32_1 : i32, i32, i32
  }
  func.func @transform_6(%arg0: i32, %arg1: i32) -> (i32, i32, i32) {
    %c0_i32 = arith.constant 0 : i32
    %c0_i32_0 = arith.constant 0 : i32
    %c0_i32_1 = arith.constant 0 : i32
    return %arg0, %c0_i32, %c0_i32_0 : i32, i32, i32
  }
}

module attributes {stable_mosaic.version = 11 : i64} {
  func.func @_main_kernel(%arg0: i32, %arg1: i32, %arg2: memref<1x256x8xbf16, #tpu.memory_space<vmem>>, %arg3: memref<256x128xbf16, #tpu.memory_space<vmem>>, %arg4: memref<1x128x128xbf16, #tpu.memory_space<vmem>>, %arg5: memref<8x128xbf16, #tpu.memory_space<vmem>>, %arg6: memref<1x128xf32, #tpu.memory_space<vmem>>, %arg7: memref<1x128xf32, #tpu.memory_space<vmem>>, %arg8: memref<1x256x128xbf16, #tpu.memory_space<vmem>>) attributes {dimension_semantics = [#tpu.dimension_semantics<parallel>, #tpu.dimension_semantics<parallel>], iteration_bounds = array<i64: 2, 1>, scalar_prefetch = 0 : i64, scratch_operands = 0 : i64, tpu.core_type = #tpu.core_type<tc>, window_params = [{transform_indices = @transform_0, window_bounds = array<i64: 1, 256, 8>}, {transform_indices = @transform_1, window_bounds = array<i64: 256, 128>}, {transform_indices = @transform_2, window_bounds = array<i64: 1, 128, 128>}, {pipeline_mode = #tpu.pipeline_mode<synchronous>, transform_indices = @transform_3, window_bounds = array<i64: 8, 128>}, {pipeline_mode = #tpu.pipeline_mode<synchronous>, transform_indices = @transform_4, window_bounds = array<i64: 1, 128>}, {pipeline_mode = #tpu.pipeline_mode<synchronous>, transform_indices = @transform_5, window_bounds = array<i64: 1, 128>}, {transform_indices = @transform_6, window_bounds = array<i64: 1, 256, 128>}]} {
    %c0 = arith.constant 0 : index
    %c0_0 = arith.constant 0 : index
    %c0_1 = arith.constant 0 : index
    %0 = vector.load %arg2[%c0, %c0_0, %c0_1] : memref<1x256x8xbf16, #tpu.memory_space<vmem>>, vector<1x256x8xbf16>
    %1 = vector.shape_cast %0 : vector<1x256x8xbf16> to vector<256x8xbf16>
    %c0_2 = arith.constant 0 : index
    %c0_3 = arith.constant 0 : index
    %2 = vector.load %arg5[%c0_2, %c0_3] : memref<8x128xbf16, #tpu.memory_space<vmem>>, vector<8x128xbf16>
    %cst = arith.constant dense<0.000000e+00> : vector<256x128xf32>
    %3 = tpu.matmul %1, %2, %cst {dimension_numbers = #tpu.dot_dimension_numbers<[1], [0], [0], [1], [0, 0, 1, 1], [], []>} : vector<256x8xbf16>, vector<8x128xbf16>, vector<256x128xf32> -> vector<256x128xf32>
    %c0_4 = arith.constant 0 : index
    %c0_5 = arith.constant 0 : index
    %4 = vector.load %arg3[%c0_4, %c0_5] : memref<256x128xbf16, #tpu.memory_space<vmem>>, vector<256x128xbf16>
    %c0_6 = arith.constant 0 : index
    %c0_7 = arith.constant 0 : index
    %c0_8 = arith.constant 0 : index
    %5 = vector.load %arg4[%c0_6, %c0_7, %c0_8] : memref<1x128x128xbf16, #tpu.memory_space<vmem>>, vector<1x128x128xbf16>
    %6 = vector.shape_cast %5 : vector<1x128x128xbf16> to vector<128x128xbf16>
    %cst_9 = arith.constant dense<0.000000e+00> : vector<256x128xf32>
    %7 = tpu.matmul %4, %6, %cst_9 {dimension_numbers = #tpu.dot_dimension_numbers<[1], [0], [0], [1], [0, 0, 1, 1], [], []>} : vector<256x128xbf16>, vector<128x128xbf16>, vector<256x128xf32> -> vector<256x128xf32>
    %8 = arith.addf %3, %7 : vector<256x128xf32>
    %c0_10 = arith.constant 0 : index
    %c0_11 = arith.constant 0 : index
    %9 = vector.load %arg6[%c0_10, %c0_11] : memref<1x128xf32, #tpu.memory_space<vmem>>, vector<1x128xf32>
    %10 = vector.broadcast %9 : vector<1x128xf32> to vector<256x128xf32>
    %11 = arith.mulf %8, %10 : vector<256x128xf32>
    %c0_12 = arith.constant 0 : index
    %c0_13 = arith.constant 0 : index
    %12 = vector.load %arg7[%c0_12, %c0_13] : memref<1x128xf32, #tpu.memory_space<vmem>>, vector<1x128xf32>
    %13 = vector.broadcast %12 : vector<1x128xf32> to vector<256x128xf32>
    %14 = arith.addf %11, %13 : vector<256x128xf32>
    %cst_14 = arith.constant 0.000000e+00 : f32
    %15 = vector.broadcast %cst_14 : f32 to vector<256x128xf32>
    %16 = arith.maximumf %14, %15 : vector<256x128xf32>
    %17 = arith.truncf %16 : vector<256x128xf32> to vector<256x128xbf16>
    %c0_15 = arith.constant 0 : index
    %c0_16 = arith.constant 0 : index
    %c0_17 = arith.constant 0 : index
    %18 = vector.load %arg8[%c0_15, %c0_16, %c0_17] : memref<1x256x128xbf16, #tpu.memory_space<vmem>>, vector<1x256x128xbf16>
    %19 = vector.shape_cast %18 : vector<1x256x128xbf16> to vector<256x128xbf16>
    %20 = vector.shape_cast %17 : vector<256x128xbf16> to vector<1x256x128xbf16>
    tpu.vector_store %arg8[%c0_15, %c0_16, %c0_17], %20 {strides = array<i32>} : memref<1x256x128xbf16, #tpu.memory_space<vmem>>, vector<1x256x128xbf16>,
    return
  }
  func.func @transform_0(%arg0: i32, %arg1: i32) -> (i32, i32, i32) {
    %c0_i32 = arith.constant 0 : i32
    %c0_i32_0 = arith.constant 0 : i32
    return %arg0, %arg1, %c0_i32 : i32, i32, i32
  }
  func.func @transform_1(%arg0: i32, %arg1: i32) -> (i32, i32) {
    %c0_i32 = arith.constant 0 : i32
    %c0_i32_0 = arith.constant 0 : i32
    return %arg1, %c0_i32 : i32, i32
  }
  func.func @transform_2(%arg0: i32, %arg1: i32) -> (i32, i32, i32) {
    %c0_i32 = arith.constant 0 : i32
    %c0_i32_0 = arith.constant 0 : i32
    %c0_i32_1 = arith.constant 0 : i32
    return %arg0, %c0_i32, %c0_i32_0 : i32, i32, i32
  }
  func.func @transform_3(%arg0: i32, %arg1: i32) -> (i32, i32) {
    %c0_i32 = arith.constant 0 : i32
    %c0_i32_0 = arith.constant 0 : i32
    %c0_i32_1 = arith.constant 0 : i32
    return %c0_i32, %c0_i32_0 : i32, i32
  }
  func.func @transform_4(%arg0: i32, %arg1: i32) -> (i32, i32) {
    %c0_i32 = arith.constant 0 : i32
    %c0_i32_0 = arith.constant 0 : i32
    %c0_i32_1 = arith.constant 0 : i32
    return %c0_i32, %c0_i32_0 : i32, i32
  }
  func.func @transform_5(%arg0: i32, %arg1: i32) -> (i32, i32) {
    %c0_i32 = arith.constant 0 : i32
    %c0_i32_0 = arith.constant 0 : i32
    %c0_i32_1 = arith.constant 0 : i32
    return %c0_i32, %c0_i32_0 : i32, i32
  }
  func.func @transform_6(%arg0: i32, %arg1: i32) -> (i32, i32, i32) {
    %c0_i32 = arith.constant 0 : i32
    %c0_i32_0 = arith.constant 0 : i32
    return %arg0, %arg1, %c0_i32 : i32, i32, i32
  }
}

</mosaic_0001>

<bundles_post_ra>
// kernel: forward.2
= control target key start
LH: loop header
LB: loop body
LE: loop exit
PB: predicated region body
PF: predicated region fallthrough
CT: control target
= control target key end

     0   :  { %s3093_s0 = inlined_call_operand.hbm [shape: bf16[2,256,8], index: 0, kind: input, shape index: {}]   ;;  %s3094_s1 = inlined_call_operand.hbm [shape: bf16[128,256], index: 1, kind: input, shape index: {}]   ;;  %s3095_s2 = inlined_call_operand.hbm [shape: bf16[4,8,128], index: 2, kind: input, shape index: {}]   ;;  %s3096_s3 = inlined_call_operand.hbm [shape: f32[4,1,128], index: 3, kind: input, shape index: {}]   ;;  %s3097_s4 = inlined_call_operand.hbm [shape: f32[4,1,128], index: 4, kind: input, shape index: {}]   ;;  %s3098_s5 = inlined_call_operand.hbm [shape: bf16[4,128,128], index: 5, kind: input, shape index: {}]   ;;  %s3099_s6 = inlined_call_operand.hbm [shape: bf16[2,128,128], index: 6, kind: output, shape index: {}]  }
   0x1   :  { %3107 = sst [smem:[#allocation20_spill]] %s3094_s1 }
   0x2   :  { %3108 = sst [smem:[#allocation21_spill]] %s3096_s3 }
   0x3   :  { %11 = vsyncpa [#allocation4], 0 }
   0x4   :  { %13 = vsyncpa [#allocation4 + $0x1], 0 }
   0x5   :  { %14 = vsyncpa [#allocation7], 0 }
   0x6   :  { %15 = vsyncpa [#allocation10], 0 }
   0x7   :  { %16 = vsyncpa [#allocation13], 0 }
   0x8   :  { %17 = vsyncpa [#allocation5], 0 }
   0x9   :  { %19 = vsyncpa [#allocation5 + $0x1], 0  ;;  %s2606_s21 = smov 0   ;;  %s2608_s22 = smov 0  }
   0xa   :  { %s2610_s23 = smov 0   ;;  %s2612_s24 = smov 0  }
   0xb   :  { %s2614_s25 = smov 0   ;;  %s2616_s26 = smov 0  }
   0xc LB: > { %s3100_s27 = sadd.s32 4294967295, %s2551_s26   ;;  %p1724_p0 = scmp.ge.s32.totalorder %s2551_s26, 1  ;;  %s2551_s26 = sphi %s2616_s26, %s25_s26   ;;  %s2547_s25 = sphi %s2614_s25, %s3133_s25   ;;  %s2543_s24 = sphi %s2612_s24, %s3132_s24   ;;  %s2539_s23 = sphi %s2610_s23, %s3131_s23   ;;  %s2535_s22 = sphi %s2608_s22, %s3130_s22   ;;  %s2531_s21 = sphi %s2606_s21, %s3129_s21  }
   0xd   : > { %p2640_p1 = scmp.eq.s32.totalorder %s3100_s27, 0  ;;  %p206_p2 = scmp.lt.s32.totalorder %s2551_s26, 3 }
   0xe   : > { %s2553_s30 = smov [#allocation6]   ;;  %s2554_s9 = smov [#allocation9]  }
   0xf   : > { %s3109_s28 = scalar_select %p2640_p1, 1, 0 }
  0x10   : > { %p2645_p3 = pnand %p1724_p0, %p206_p2  ;;  %s221_s7 = sshll.u32 %s2553_s30, 4  ;;  %s2649_s7 = int_to_ptr.vmem [resolvable:$true] %s221_s7 }
  0x11   : > { %s247_s10 = sshll.u32 %s2554_s9, 4  ;;  %s3112_s1 = sld [smem:[#allocation20_spill]]  ;;  %s2660_s10 = int_to_ptr.vmem [resolvable:$true] %s247_s10 }
  0x12   : > { %s3110_s29 = scalar_select %p2645_p3, 1, 0 }
  0x13   : > { %p2115_p4 = pneg %p2645_p3 }
  0x15   : > { %p2656_p6 = pnand %p2115_p4, %p2640_p1 }
  0x17   : > { %s2287_s13 = scalar_lea.hbm %s3112_s1, 2048  ;;  %p2670_p8 = pneg %p2656_p6 }
  0x18   : > { %p2288_p7 = scmp.ne.s32.totalorder %s3112_s1, %s2287_s13  ;;  %p2294_p11 = scmp.lt.u32.totalorder %s2287_s13, %s3112_s1 }
  0x1a   : > { %p2290_p9 = pnand %p2670_p8, %p2288_p7 }
  0x1c   : > { %p2291_p10 = pneg %p2290_p9 }
  0x1e   : > { %p2296_p12 = pnand %p2294_p11, %p2291_p10 }
  0x20   : > { %2299 = shalt.err (!%p2296_p12)
}
  0x21   : > { %s2300_s19 = scalar_lea.vmem %s2649_s7, 2048  ;;  %p2308_p4 = scmp.lt.s32.totalorder %s2649_s7, %s2649_s7 }
  0x22   : > { %p2301_p13 = scmp.ne.s32.totalorder %s2649_s7, %s2300_s19  ;;  %p2309_p5 = scmp.lt.s32.totalorder %s2300_s19, %s2300_s19 }
  0x24   : > { %p2303_p0 = pnand %p2301_p13, %p2670_p8  ;;  %p2310_p7 = por %p2309_p5, %p2308_p4 }
  0x26   : > { %p2304_p2 = pneg %p2303_p0 }
  0x28   : > { %p2311_p9 = pnand %p2310_p7, %p2304_p2 }
  0x2a   : > { %2314 = shalt.err (!%p2311_p9)
}
  0x2b   : > { %s2555_s20 = smov 128   ;;  %s2556_s30 = smov 8  }
  0x2c   : > { %2118 = dma.hbm_to_vmem [thread:$0]  (!%p2656_p6), %s3112_s1, 2048, %s2649_s7, [#allocation7], %s2555_s20, %s2555_s20, %s2556_s30  }
  0x2d   : > { %s3114_s3 = sld [smem:[#allocation21_spill]] }
  0x33   : > { %s2315_s14 = scalar_lea.hbm %s3114_s3, 64 }
  0x34   : > { %p2316_p5 = scmp.ne.s32.totalorder %s3114_s3, %s2315_s14  ;;  %p2322_p12 = scmp.lt.u32.totalorder %s2315_s14, %s3114_s3 }
  0x36   : > { %p2318_p10 = pnand %p2316_p5, %p2670_p8 }
  0x38   : > { %p2319_p11 = pneg %p2318_p10 }
  0x3a   : > { %p2324_p13 = pnand %p2322_p12, %p2319_p11 }
  0x3c   : > { %2327 = shalt.err (!%p2324_p13)
}
  0x3d   : > { %s2328_s7 = scalar_lea.vmem %s2660_s10, 64  ;;  %p2336_p7 = scmp.lt.s32.totalorder %s2660_s10, %s2660_s10 }
  0x3e   : > { %p2329_p0 = scmp.ne.s32.totalorder %s2660_s10, %s2328_s7  ;;  %p2337_p9 = scmp.lt.s32.totalorder %s2328_s7, %s2328_s7 }
  0x40   : > { %p2331_p2 = pnand %p2329_p0, %p2670_p8  ;;  %p2338_p5 = por %p2337_p9, %p2336_p7 }
  0x42   : > { %p2332_p4 = pneg %p2331_p2 }
  0x44   : > { %p2339_p10 = pnand %p2338_p5, %p2332_p4 }
  0x46   : > { %2342 = shalt.err (!%p2339_p10)
}
  0x47   : > { %s3104_s20 = smov 16   ;;  %s3105_s30 = smov 1  }
  0x48   : > { %2124 = dma.hbm_to_vmem [thread:$0]  (!%p2656_p6), %s3114_s3, 64, %s2660_s10, [#allocation10], %s3104_s20, %s3104_s20, %s3105_s30  }
  0x49   : > { %s2559_s12 = smov [#allocation8]   ;;  %s2343_s17 = scalar_lea.hbm %s3095_s2, 256 }
  0x4a   : > { %s234_s13 = sshll.u32 %s2559_s12, 4  ;;  %p2344_p11 = scmp.ne.s32.totalorder %s3095_s2, %s2343_s17  ;;  %s235_s13 = int_to_ptr.vmem [resolvable:$true] %s234_s13 }
  0x4b   : > { %p2350_p0 = scmp.lt.u32.totalorder %s2343_s17, %s3095_s2 }
  0x4c   : > { %p2346_p12 = pnand %p2344_p11, %p2670_p8 }
  0x4e   : > { %p2347_p13 = pneg %p2346_p12 }
  0x50   : > { %p2352_p2 = pnand %p2350_p0, %p2347_p13 }
  0x52   : > { %2355 = shalt.err (!%p2352_p2)
}
  0x53   : > { %s2356_s10 = scalar_lea.vmem %s235_s13, 256  ;;  %p2364_p5 = scmp.lt.s32.totalorder %s235_s13, %s235_s13 }
  0x54   : > { %p2357_p4 = scmp.ne.s32.totalorder %s235_s13, %s2356_s10  ;;  %p2365_p10 = scmp.lt.s32.totalorder %s2356_s10, %s2356_s10 }
  0x56   : > { %p2359_p7 = pnand %p2357_p4, %p2670_p8  ;;  %p2366_p3 = por %p2365_p10, %p2364_p5 }
  0x58   : > { %p2360_p9 = pneg %p2359_p7 }
  0x5a   : > { %p2367_p1 = pnand %p2366_p3, %p2360_p9 }
  0x5c   : > { %2370 = shalt.err (!%p2367_p1)
}
  0x5d   : > { %s2560_s9 = smov 64   ;;  %s2561_s11 = smov 4  }
  0x5e   : > { %2121 = dma.hbm_to_vmem [thread:$0]  (!%p2656_p6), %s3095_s2, 256, %s235_s13, [#allocation7], %s2560_s9, %s2560_s9, %s2561_s11  }
  0x5f   : > { %s2562_s14 = smov [#allocation11]   ;;  %s2563_s17 = smov [#allocation12]  }
  0x60   : > { %s260_s15 = sshll.u32 %s2562_s14, 4  ;;  %s273_s18 = sshll.u32 %s2563_s17, 4  ;;  %s261_s15 = int_to_ptr.vmem [resolvable:$true] %s260_s15  ;;  %s274_s18 = int_to_ptr.vmem [resolvable:$true] %s273_s18 }
  0x61   : > { %s2371_s10 = scalar_lea.hbm %s3097_s4, 64 }
  0x62   : > { %p2372_p1 = scmp.ne.s32.totalorder %s3097_s4, %s2371_s10  ;;  %p2378_p12 = scmp.lt.u32.totalorder %s2371_s10, %s3097_s4 }
  0x64   : > { %p2374_p3 = pnand %p2372_p1, %p2670_p8 }
  0x66   : > { %p2375_p11 = pneg %p2374_p3 }
  0x68   : > { %p2380_p13 = pnand %p2378_p12, %p2375_p11 }
  0x6a   : > { %2383 = shalt.err (!%p2380_p13)
}
  0x6b   : > { %s2384_s13 = scalar_lea.vmem %s261_s15, 64  ;;  %p2392_p7 = scmp.lt.s32.totalorder %s261_s15, %s261_s15 }
  0x6c   : > { %p2385_p0 = scmp.ne.s32.totalorder %s261_s15, %s2384_s13  ;;  %p2393_p9 = scmp.lt.s32.totalorder %s2384_s13, %s2384_s13 }
  0x6e   : > { %p2387_p2 = pnand %p2385_p0, %p2670_p8  ;;  %p2394_p5 = por %p2393_p9, %p2392_p7 }
  0x70   : > { %p2388_p4 = pneg %p2387_p2 }
  0x72   : > { %p2395_p10 = pnand %p2394_p5, %p2388_p4 }
  0x74   : > { %2398 = shalt.err (!%p2395_p10)
}
  0x75   : > { %s3115_s20 = smov 1   ;;  %s3116_s30 = smov 16  }
  0x76   : > { %2127 = dma.hbm_to_vmem [thread:$0]  (!%p2656_p6), %s3097_s4, 64, %s261_s15, [#allocation10], %s3116_s30, %s3116_s30, %s3115_s20  }
  0x77   : > { %s2399_s14 = scalar_lea.hbm %s3098_s5, 4096 }
  0x78   : > { %p2400_p1 = scmp.ne.s32.totalorder %s3098_s5, %s2399_s14  ;;  %p2406_p12 = scmp.lt.u32.totalorder %s2399_s14, %s3098_s5 }
  0x7a   : > { %p2402_p3 = pnand %p2400_p1, %p2670_p8 }
  0x7c   : > { %p2403_p11 = pneg %p2402_p3 }
  0x7e   : > { %p2408_p13 = pnand %p2406_p12, %p2403_p11 }
  0x80   : > { %2411 = shalt.err (!%p2408_p13)
}
  0x81   : > { %s2412_s13 = scalar_lea.vmem %s274_s18, 4096  ;;  %p2420_p7 = scmp.lt.s32.totalorder %s274_s18, %s274_s18 }
  0x82   : > { %p2413_p0 = scmp.ne.s32.totalorder %s274_s18, %s2412_s13  ;;  %p2421_p9 = scmp.lt.s32.totalorder %s2412_s13, %s2412_s13 }
  0x84   : > { %p2415_p2 = pnand %p2413_p0, %p2670_p8  ;;  %p2422_p5 = por %p2421_p9, %p2420_p7 }
  0x86   : > { %p2416_p4 = pneg %p2415_p2 }
  0x88   : > { %p2423_p10 = pnand %p2422_p5, %p2416_p4 }
  0x8a   : > { %2426 = shalt.err (!%p2423_p10)
}
  0x8b   : > { %2130 = dma.hbm_to_vmem [thread:$0]  (!%p2656_p6), %s3098_s5, 4096, %s274_s18, [#allocation13], %s2560_s9, %s2560_s9, %s2561_s11  }
  0x8c   : > { %s1723_s8 = sadd.s32 4294967294, %s2551_s26   ;;  %s37_s16 = sadd.s32 1, %s2547_s25 }
  0x8d   : > { %s46_s30 = sadd.s32 1, %s2539_s23  ;;  %p39_p8 = scmp.ge.s32.totalorder %s37_s16, 2 }
  0x8e   : > { %p53_p1 = scmp.ne.s32.totalorder %s2539_s23, %s2535_s22  ;;  %p54_p3 = scmp.eq.s32.totalorder %s2551_s26, 0 }
  0x8f   : > { %p59_p11 = scmp.ne.s32.totalorder %s2535_s22, %s2531_s21  ;;  %s3135_s16 = smov (%p39_p8, %s37_s16), 0 }
  0x90   : > { %p2790_p12 = por %p54_p3, %p53_p1  ;;  %p3118_p13 = scmp.ne.s32.totalorder %s3109_s28, 0 }
  0x91   : > { %s41_s3 = ssub.s32 %s2547_s25, %s3135_s16  ;;  %s3120_s27 = sadd.s32 4294967295, %s2551_s26  }
  0x92   : > { %p2796_p6 = por %p3118_p13, %p59_p11  ;;  %p193_p0 = scmp.eq.s32.totalorder %s3120_s27, 1 }
  0x93   : > { %p44_p2 = scmp.eq.s32.totalorder %s41_s3, 0  ;;  %p199_p4 = scmp.eq.s32.totalorder %s1723_s8, 1 }
  0x94   : > { %p2804_p7 = por %p193_p0, %p53_p1  ;;  %p2144_p9 = scmp.lt.s32.totalorder %s2551_s26, 2 }
  0x95   : > { %s2810_s14 = scalar_select %p44_p2, %s2539_s23, %s46_s30  }
  0x96   : > { %s3121_s12 = scalar_select %p2804_p7, 1, 0 }
  0x97   : > { %p2812_p5 = por %p199_p4, %p59_p11  ;;  %s287_s19 = sand.u32 1, %s2539_s23  }
  0x98   : > { %s1731_s7 = sshll.u32 %s287_s19, 7  ;;  %s1832_s10 = sshll.u32 %s2547_s25, 11 }
  0x99   : > { %s3122_s17 = scalar_select %p2812_p5, 1, 0 }
  0x9a   : > { %s2821_s20 = scalar_lea.hbm %s3093_s0, %s1832_s10  ;;  %s291_s8 = scalar_lea.vmem [#allocation3], %s1731_s7 }
  0x9b   : > { %s300_s3 = sshll.u32 %s291_s8, 4  ;;  %p2827_p10 = pnand %p2144_p9, %p2790_p12  ;;  %s2823_s3 = int_to_ptr.vmem [resolvable:$true] %s300_s3 }
  0x9c   : > { %s2831_s27 = scalar_lea.sflag [#allocation4], %s287_s19  ;;  %s2427_s13 = scalar_lea.hbm %s2821_s20, 2048 }
  0x9d   : > { %p2428_p8 = scmp.ne.s32.totalorder %s2821_s20, %s2427_s13  ;;  %p2429_p1 = pneg %p2827_p10 }
  0x9e   : > { %s2432_s1 = scalar_lea.hbm %s3093_s0, 4096  ;;  %p2433_p12 = scmp.lt.u32.totalorder %s2821_s20, %s3093_s0 }
  0x9f   : > { %p2430_p3 = pnand %p2429_p1, %p2428_p8  ;;  %p2434_p13 = scmp.lt.u32.totalorder %s2432_s1, %s2427_s13 }
  0xa0   : > { %p2436_p2 = scmp.lt.u32.totalorder %s2427_s13, %s2821_s20 }
  0xa1   : > { %p2431_p11 = pneg %p2430_p3  ;;  %p2435_p0 = por %p2434_p13, %p2433_p12 }
  0xa3   : > { %p2437_p4 = por %p2436_p2, %p2435_p0 }
  0xa5   : > { %p2438_p9 = pnand %p2437_p4, %p2431_p11 }
  0xa7   : > { %2441 = shalt.err (!%p2438_p9)
}
  0xa8   : > { %s2442_s19 = scalar_lea.vmem %s2823_s3, 2048  ;;  %s2564_s7 = smov [#allocation3]  }
  0xa9   : > { %p2443_p8 = scmp.ne.s32.totalorder %s2823_s3, %s2442_s19  ;;  %s2447_s10 = sshll.u32 %s2564_s7, 4  ;;  %s2448_s10 = int_to_ptr.vmem [resolvable:$false] %s2447_s10 }
  0xaa   : > { %s2449_s15 = scalar_lea.vmem %s2448_s10, 4096  ;;  %p2450_p7 = scmp.lt.s32.totalorder %s2823_s3, %s2448_s10 }
  0xab   : > { %p2445_p3 = pnand %p2443_p8, %p2429_p1  ;;  %p2451_p12 = scmp.lt.s32.totalorder %s2449_s15, %s2442_s19 }
  0xad   : > { %p2446_p5 = pneg %p2445_p3  ;;  %p2452_p13 = por %p2451_p12, %p2450_p7 }
  0xaf   : > { %p2453_p0 = pnand %p2452_p13, %p2446_p5 }
  0xb1   : > { %2456 = shalt.err (!%p2453_p0)
}
  0xb2   : > { %2134 = dma.hbm_to_vmem [thread:$0]  (!%p2827_p10), %s2821_s20, 2048, %s2823_s3, %s2831_s27, %s2560_s9, %s2560_s9, %s2561_s11  }
  0xb3   : > { %p3124_p1 = scmp.ne.s32.totalorder %s3110_s29, 0 }
  0xb4   : > { %s2865_s13 = sand.u32 (!%p3124_p1), 1, %s2535_s22  }
  0xb5   : > { %312 = sbr.rel (%p3124_p1) target bundleno = 1169 (0x491), region = 44  ;;  %s1735_s1 = sshll.u32 (!%p3124_p1), %s2865_s13, 7 }
  0xb6   : > { %s315_s8 = scalar_lea.sflag (!%p3124_p1), [#allocation4], %s2865_s13  ;;  %s2869_s19 = scalar_lea.vmem (!%p3124_p1), [#allocation3], %s1735_s1 }
  0xbc   : > { %2510 = dma.done.wait (%p2796_p6), %s315_s8, 2048  }
  0xbd   : > { %2512 = vsyncadd (%p2796_p6), %s315_s8, 4294965248  ;;  %p3125_p7 = scmp.ne.s32.totalorder %s3109_s28, 0 }
  0xbf   : > { %2514 = dma.done.wait (%p3125_p7), [#allocation7], 2304  }
  0xc0   : > { %2516 = vsyncadd (%p3125_p7), [#allocation7], 4294964992 }
  0xc1   : > { %2518 = dma.done.wait (%p3125_p7), [#allocation10], 128  }
  0xc2   : > { %2520 = vsyncadd (%p3125_p7), [#allocation10], 4294967168 }
  0xc3   : > { %2522 = dma.done.wait (%p3125_p7), [#allocation13], 4096  }
  0xc4   : > { %2524 = vsyncadd (%p3125_p7), [#allocation13], 4294963200  ;;  %v2215_v0 = vld [vmem:[%s2869_s19 + $0x40] sm:$0xff]   ;;  %v2217_v2 = vld [vmem:[%s2869_s19 + $0x48] sm:$0xff]   ;;  %vm374_vm0 = vcmask 64512   ;;  %v2565_v18 = vmov 0.0  }
  0xc5   : > { %v2216_v1 = vld [vmem:[%s2869_s19] sm:$0xff]   ;;  %1859 = vmatprep.subr.bf16.mxu0 %v2215_v0  ;;  %v2218_v3 = vld [vmem:[%s2869_s19 + $0x8] sm:$0xff]   ;;  %v2219_v4 = vld [vmem:[%s2869_s19 + $0x50] sm:$0xff]   ;;  %375 = vst.msk [vmem:[#allocation2] sm:$0xff] %vm374_vm0, %v2565_v18  ;;  %1971 = vmatprep.subr.bf16.mxu1 %v2565_v18  ;;  %vm783_vm1 = vcmask 1043456   ;;  %vm2566_vm2 = vmmov 0  }
  0xc6   : > { %1860 = vmatpush3.bf16.msra.mxu0 %v2216_v1  ;;  %v2220_v5 = vld [vmem:[%s2869_s19 + $0x10] sm:$0xff]   ;;  %v2221_v6 = vld [vmem:[%s2869_s19 + $0x58] sm:$0xff]   ;;  %v2223_v8 = vld [vmem:[%s2869_s19 + $0x60] sm:$0xff]   ;;  %376 = vst.msk [vmem:[#allocation2 + $0x8] sm:$0xff] %vm374_vm0, %v2565_v18  ;;  %1973 = vmatprep.mubr.msk.bf16.mxu1 %vm2566_vm2, %v2565_v18  ;;  %s1741_s28 = sshll.u32 %s2865_s13, 6  ;;  %s1840_s9 = sshll.u32 %s2543_s24, 10 }
  0xc7   : > { %1861 = vmatprep.subr.bf16.mxu0 %v2217_v2  ;;  %v2222_v7 = vld [vmem:[%s2869_s19 + $0x18] sm:$0xff]   ;;  %v2224_v9 = vld [vmem:[%s2869_s19 + $0x20] sm:$0xff]   ;;  %v2225_v10 = vld [vmem:[%s2869_s19 + $0x68] sm:$0xff]   ;;  %377 = vst.msk [vmem:[#allocation2 + $0x10] sm:$0xff] %vm374_vm0, %v2565_v18  ;;  %s3018_s29 = scalar_lea.vmem [#allocation14], %s1741_s28  ;;  %s3041_s3 = scalar_lea.hbm %s3099_s6, %s1840_s9 }
  0xc8   : > { %v2226_v11 = vld [vmem:[%s2869_s19 + $0x28] sm:$0xff]   ;;  %v2227_v13 = vld [vmem:[%s2869_s19 + $0x70] sm:$0xff]   ;;  %v2229_v15 = vld [vmem:[%s2869_s19 + $0x78] sm:$0xff]   ;;  %378 = vst.msk [vmem:[#allocation2 + $0x18] sm:$0xff] %vm374_vm0, %v2565_v18  ;;  %s1588_s11 = sshll.u32 %s3018_s29, 4  ;;  %s1575_s30 = scalar_lea.sflag [#allocation5], %s2865_s13  ;;  %s3043_s11 = int_to_ptr.vmem [resolvable:$true] %s1588_s11 }
  0xc9   : > { %v2233_v12 = vld [vmem:[#allocation6 + $0x4] ss:$8 sps:$4 sm:$0xff]   ;;  %v2228_v14 = vld [vmem:[%s2869_s19 + $0x30] sm:$0xff]   ;;  %v2230_v16 = vld [vmem:[%s2869_s19 + $0x38] sm:$0xff]   ;;  %379 = vst.msk [vmem:[#allocation2 + $0x20] sm:$0xff] %vm374_vm0, %v2565_v18  ;;  %s2457_s27 = scalar_lea.vmem %s3043_s11, 1024 }
  0xca   : > { %1862 = vmatpush3.bf16.msra.mxu0 %v2218_v3  ;;  %663 = vmatprep.mubr.bf16.mxu0 %v2233_v12  ;;  %v2231_v17 = vld [vmem:[#allocation6] ss:$8 sps:$4 sm:$0xff]   ;;  %380 = vst.msk [vmem:[#allocation2 + $0x28] sm:$0xff] %vm374_vm0, %v2565_v18  ;;  %381 = vst.msk [vmem:[#allocation2 + $0x30] sm:$0xff] %vm374_vm0, %v2565_v18  ;;  %v2234_v21 = vld [vmem:[#allocation6 + $0x14] ss:$8 sps:$4 sm:$0xff]   ;;  %p2458_p6 = scmp.ne.s32.totalorder %s3043_s11, %s2457_s27 }
  0xcb   : > { %1863 = vmatprep.subr.bf16.mxu0 %v2219_v4  ;;  %382 = vst.msk [vmem:[#allocation2 + $0x38] sm:$0xff] %vm374_vm0, %v2565_v18  ;;  %383 = vst.msk [vmem:[#allocation2 + $0x40] sm:$0xff] %vm374_vm0, %v2565_v18  ;;  %v779_v19 = vld [vmem:[#allocation8] sm:$0xf]  ;;  %v2236_v22 = vld [vmem:[#allocation6 + $0x10] ss:$8 sps:$4 sm:$0xff]  }
  0xcc   : > { %384 = vst.msk [vmem:[#allocation2 + $0x48] sm:$0xff] %vm374_vm0, %v2565_v18  ;;  %385 = vst.msk [vmem:[#allocation2 + $0x50] sm:$0xff] %vm374_vm0, %v2565_v18  ;;  %v785_v20 = vsel %vm783_vm1, %v779_v19, 0  ;;  %v2237_v23 = vld [vmem:[#allocation6 + $0x24] ss:$8 sps:$4 sm:$0xff]   ;;  %v2246_v26 = vld [vmem:[#allocation12] sm:$0xff]  }
  0xcd   : > { %386 = vst.msk [vmem:[#allocation2 + $0x58] sm:$0xff] %vm374_vm0, %v2565_v18  ;;  %387 = vst.msk [vmem:[#allocation2 + $0x60] sm:$0xff] %vm374_vm0, %v2565_v18  ;;  %1972 = vmatpush3.bf16.msra.mxu1 %v785_v20  ;;  %v2239_v24 = vld [vmem:[#allocation6 + $0x20] ss:$8 sps:$4 sm:$0xff]   ;;  %v2240_v25 = vld [vmem:[#allocation6 + $0x34] ss:$8 sps:$4 sm:$0xff]  }
  0xce   : > { %1864 = vmatpush3.bf16.msra.mxu0 %v2220_v5  ;;  %388 = vst.msk [vmem:[#allocation2 + $0x68] sm:$0xff] %vm374_vm0, %v2565_v18  ;;  %389 = vst.msk [vmem:[#allocation2 + $0x70] sm:$0xff] %vm374_vm0, %v2565_v18  ;;  %1997 = vmatprep.subr.bf16.mxu1 %v2565_v18  ;;  %v2247_v27 = vld [vmem:[#allocation12 + $0x8] sm:$0xff]   ;;  %v2242_v28 = vld [vmem:[#allocation6 + $0x30] ss:$8 sps:$4 sm:$0xff]   ;;  %p3126_p5 = scmp.ne.s32.totalorder %s3121_s12, 0 }
  0xcf   : > { %1865 = vmatprep.subr.bf16.mxu0 %v2221_v6  ;;  %390 = vst.msk [vmem:[#allocation2 + $0x78] sm:$0xff] %vm374_vm0, %v2565_v18  ;;  %v2243_v29 = vld [vmem:[#allocation6 + $0x44] ss:$8 sps:$4 sm:$0xff]   ;;  %v2254_v31 = vld [vmem:[#allocation12 + $0x18] sm:$0xff]   ;;  %v2245_v32 = vld [vmem:[#allocation6 + $0x40] ss:$8 sps:$4 sm:$0xff]  }
  0xd0   : > { %v2252_v30 = vld [vmem:[#allocation12 + $0x10] sm:$0xff]   ;;  %v2248_v33 = vld [vmem:[#allocation6 + $0x54] ss:$8 sps:$4 sm:$0xff]   ;;  %v2261_v35 = vld [vmem:[#allocation12 + $0x28] sm:$0xff]   ;;  %p2459_p10 = pnand %p2458_p6, %p3126_p5  ;;  %s2568_s24 = smov [#allocation14]  }
  0xd1   : > { %v2259_v34 = vld [vmem:[#allocation12 + $0x20] sm:$0xff]   ;;  %v2255_v37 = vld [vmem:[#allocation6 + $0x64] ss:$8 sps:$4 sm:$0xff]   ;;  %v2257_v38 = vld [vmem:[#allocation6 + $0x60] ss:$8 sps:$4 sm:$0xff]   ;;  %s2461_s7 = sshll.u32 %s2568_s24, 4  ;;  %s2462_s7 = int_to_ptr.vmem [resolvable:$false] %s2461_s7 }
  0xd2   : > { %1866 = vmatpush3.bf16.msra.mxu0 %v2222_v7  ;;  %v2250_v36 = vld [vmem:[#allocation6 + $0x50] ss:$8 sps:$4 sm:$0xff]   ;;  %v2262_v39 = vld [vmem:[#allocation6 + $0x74] ss:$8 sps:$4 sm:$0xff]   ;;  %v391_v41 = vld [vmem:[#allocation2] sm:$0xff]  ;;  %p2460_p11 = pneg %p2459_p10  ;;  %s2463_s10 = scalar_lea.vmem %s2462_s7, 2048 }
  0xd3   : > { %1867 = vmatprep.subr.bf16.mxu0 %v2223_v8  ;;  %v392_v45 = vld [vmem:[#allocation2 + $0x8] sm:$0xff]  ;;  %v952_v50 = vld [vmem:[#allocation8 + $0x4] sm:$0xf]  ;;  %v2251_v55 = vld [vmem:[#allocation12 + $0x40] sm:$0xff]   ;;  %p2464_p2 = scmp.lt.s32.totalorder %s3043_s11, %s2462_s7  ;;  %p2465_p4 = scmp.lt.s32.totalorder %s2463_s10, %s2457_s27 }
  0xd4   : > { %v959_v54 = vsel %vm783_vm1, %v952_v50, 0  ;;  %v2253_v57 = vld [vmem:[#allocation12 + $0x48] sm:$0xff]   ;;  %v2258_v58 = vld [vmem:[#allocation12 + $0x50] sm:$0xff]   ;;  %v2260_v59 = vld [vmem:[#allocation12 + $0x58] sm:$0xff]  }
  0xd5   : > { %v2264_v60 = vld [vmem:[#allocation6 + $0x70] ss:$8 sps:$4 sm:$0xff]   ;;  %v2266_v62 = vld [vmem:[#allocation12 + $0x30] sm:$0xff]   ;;  %v2267_v0 = vld [vmem:[#allocation12 + $0x68] sm:$0xff]   ;;  %p2466_p9 = por %p2465_p4, %p2464_p2 }
  0xd6   : > { %1868 = vmatpush3.bf16.msra.mxu0 %v2224_v9  ;;  %v2265_v61 = vld [vmem:[#allocation12 + $0x60] sm:$0xff]   ;;  %v2268_v1 = vld [vmem:[#allocation12 + $0x38] sm:$0xff]   ;;  %v2269_v9 = vld [vmem:[#allocation12 + $0x70] sm:$0xff]  }
  0xd7   : > { %1869 = vmatprep.subr.bf16.mxu0 %v2225_v10  ;;  %v393_v4 = vld [vmem:[#allocation2 + $0x10] sm:$0xff]  ;;  %v394_v6 = vld [vmem:[#allocation2 + $0x18] sm:$0xff]  ;;  %v396_v19 = vld [vmem:[#allocation2 + $0x28] sm:$0xff]  ;;  %p2467_p8 = pnand %p2466_p9, %p2460_p11 }
  0xda   : > { %1870 = vmatpush3.bf16.msra.mxu0 %v2226_v11 }
  0xdb   : > { %1871 = vmatprep.subr.bf16.mxu0 %v2227_v13  ;;  %v2270_v13 = vld [vmem:[#allocation12 + $0x78] sm:$0xff]  }
  0xde   : > { %1872 = vmatpush3.bf16.msra.mxu0 %v2228_v14 }
  0xdf   : > { %1873 = vmatprep.subr.bf16.mxu0 %v2229_v15 }
  0xe2   : > { %1874 = vmatpush3.bf16.msra.mxu0 %v2230_v16  ;;  %v395_v16 = vld [vmem:[#allocation2 + $0x20] sm:$0xff] }
  0xe3   : > { %1977 = vmatprep.subr.bf16.mxu0 %v2565_v18 }
  0xe5   : > { %664 = vmatmul.mubr.bf16.vlgmr.msra.gmra.mrb[0].mxu0 %v2231_v17 }
  0xe6   : > { %671 = vmatprep.mubr.bf16.mxu0 %v2234_v21  ;;  %1978 = vmatpush3.bf16.msra.mxu0 %v2246_v26 }
  0xe7   : > { %1979 = vmatprep.subr.bf16.mxu0 %v2565_v18 }
  0xea   : > { %1980 = vmatpush3.bf16.msra.mxu0 %v2247_v27 }
  0xeb   : > { %1981 = vmatprep.subr.bf16.mxu0 %v2565_v18 }
  0xed   : > { %672 = vmatmul.mubr.bf16.gmra.mrb[4].mxu0 %v2236_v22 }
  0xee   : > { %679 = vmatprep.mubr.bf16.mxu0 %v2237_v23  ;;  %1982 = vmatpush3.bf16.msra.mxu0 %v2252_v30 }
  0xef   : > { %1983 = vmatprep.subr.bf16.mxu0 %v2565_v18 }
  0xf2   : > { %1984 = vmatpush3.bf16.msra.mxu0 %v2254_v31 }
  0xf3   : > { %1985 = vmatprep.subr.bf16.mxu0 %v2565_v18 }
  0xf5   : > { %680 = vmatmul.mubr.bf16.gmra.mrb[8].mxu0 %v2239_v24 }
  0xf6   : > { %687 = vmatprep.mubr.bf16.mxu0 %v2240_v25  ;;  %1986 = vmatpush3.bf16.msra.mxu0 %v2259_v34  ;;  %v397_v25 = vld [vmem:[#allocation2 + $0x30] sm:$0xff] }
  0xf7   : > { %1987 = vmatprep.subr.bf16.mxu0 %v2565_v18 }
  0xfa   : > { %1988 = vmatpush3.bf16.msra.mxu0 %v2261_v35  ;;  %v399_v35 = vld [vmem:[#allocation2 + $0x40] sm:$0xff] }
  0xfb   : > { %1989 = vmatprep.subr.bf16.mxu0 %v2565_v18 }
  0xfd   : > { %688 = vmatmul.mubr.bf16.gmra.mrb[12].mxu0 %v2242_v28 }
  0xfe   : > { %695 = vmatprep.mubr.bf16.mxu0 %v2243_v29  ;;  %1990 = vmatpush3.bf16.msra.mxu0 %v2266_v62  ;;  %v398_v29 = vld [vmem:[#allocation2 + $0x38] sm:$0xff] }
  0xff   : > { %1991 = vmatprep.subr.bf16.mxu0 %v2565_v18 }
 0x102   : > { %1992 = vmatpush3.bf16.msra.mxu0 %v2268_v1 }
 0x103   : > { %2029 = vmatprep.subr.bf16.mxu0 %v2565_v18 }
 0x105   : > { %696 = vmatmul.mubr.bf16.gmra.mrb[16].mxu0 %v2245_v32 }
 0x106   : > { %703 = vmatprep.mubr.bf16.mxu0 %v2248_v33 }
 0x10d   : > { %704 = vmatmul.mubr.bf16.gmra.mrb[20].mxu0 %v2250_v36 }
 0x10e   : > { %711 = vmatprep.mubr.bf16.mxu0 %v2255_v37 }
 0x115   : > { %712 = vmatmul.mubr.bf16.gmra.mrb[24].mxu0 %v2257_v38 }
 0x116   : > { %719 = vmatprep.mubr.bf16.mxu0 %v2262_v39  ;;  %v400_v39 = vld [vmem:[#allocation2 + $0x48] sm:$0xff] }
 0x11d   : > { %720 = vmatmul.mubr.bf16.gmra.mrb[28].mxu0 %v2264_v60 }
 0x11e   : > { %1993 = vmatprep.mubr.msk.bf16.mxu0 %vm2566_vm2, %v2565_v18 }
 0x1b8   : > { %v1875_v40 = vpop.f32.mrb[0].mxu0 }
 0x1b9   : > { %v1876_v42 = vpop.f32.mrb[1].mxu0 }
 0x1ba   : > { %v1877_v43 = vadd.f32 %v1876_v42, %v1875_v40  ;;  %v1878_v44 = vpop.f32.mrb[2].mxu0 }
 0x1bb   : > { %v1879_v46 = vpop.f32.mrb[3].mxu0 }
 0x1bc   : > { %v728_v47 = vadd.f32 %v1877_v43, %v391_v41  ;;  %v1880_v48 = vadd.f32 %v1879_v46, %v1878_v44 }
 0x1be   : > { %745 = vst.msk [vmem:[#allocation2] sm:$0xff] %vm374_vm0, %v728_v47  ;;  %v729_v49 = vadd.f32 %v1880_v48, %v392_v45  ;;  %v401_v45 = vld [vmem:[#allocation2 + $0x50] sm:$0xff] }
 0x1c0   : > { %746 = vst.msk [vmem:[#allocation2 + $0x8] sm:$0xff] %vm374_vm0, %v729_v49  ;;  %v1881_v63 = vpop.f32.mrb[4].mxu0  ;;  %v402_v49 = vld [vmem:[#allocation2 + $0x58] sm:$0xff] }
 0x1c1   : > { %v1882_v2 = vpop.f32.mrb[5].mxu0 }
 0x1c2   : > { %v1884_v3 = vpop.f32.mrb[6].mxu0  ;;  %v1883_v5 = vadd.f32 %v1882_v2, %v1881_v63  ;;  %v1776_v2 = vld [vmem:[#allocation11] ss:$0 sm:$0xff] }
 0x1c3   : > { %v1885_v7 = vpop.f32.mrb[7].mxu0 }
 0x1c4   : > { %v1886_v8 = vadd.f32 %v1885_v7, %v1884_v3  ;;  %v730_v10 = vadd.f32 %v1883_v5, %v393_v4 }
 0x1c5   : > { %v764_v51 = vld [vmem:[#allocation2] sm:$0xff] }
 0x1c6   : > { %v731_v11 = vadd.f32 %v1886_v8, %v394_v6  ;;  %747 = vst.msk [vmem:[#allocation2 + $0x10] sm:$0xff] %vm374_vm0, %v730_v10  ;;  %v2271_v10 = vld [vmem:[#allocation12 + $0x80] sm:$0xff]  }
 0x1c7   : > { %v765_v52 = vld [vmem:[#allocation2 + $0x8] sm:$0xff] }
 0x1c8   : > { %v774_v53 = vpack.c.bf16 %v765_v52, %v764_v51  ;;  %748 = vst.msk [vmem:[#allocation2 + $0x18] sm:$0xff] %vm374_vm0, %v731_v11  ;;  %v1887_v12 = vpop.f32.mrb[8].mxu0 }
 0x1c9   : > { %v1888_v14 = vpop.f32.mrb[9].mxu0 }
 0x1ca   : > { %1974 = vmatmul.mubr.msk.bf16.vlgmr.msra.gmra.mrb[0].mxu1 %vm374_vm0, %v774_v53  ;;  %v954_v56 = vrot.slane %v774_v53, 4  ;;  %v1890_v15 = vpop.f32.mrb[10].mxu0  ;;  %v1889_v17 = vadd.f32 %v1888_v14, %v1887_v12 }
 0x1cb   : > { %1998 = vmatpush3.bf16.msra.mxu1 %v959_v54  ;;  %1999 = vmatprep.mubr.msk.bf16.mxu1 %vm2566_vm2, %v2565_v18  ;;  %v1891_v20 = vpop.f32.mrb[11].mxu0  ;;  %v403_v54 = vld [vmem:[#allocation2 + $0x60] sm:$0xff] }
 0x1cc   : > { %2003 = vmatprep.subr.bf16.mxu1 %v2565_v18  ;;  %v1892_v21 = vadd.f32 %v1891_v20, %v1890_v15  ;;  %v732_v22 = vadd.f32 %v1889_v17, %v395_v16  ;;  %v1129_v20 = vld [vmem:[#allocation8 + $0x8] sm:$0xf] }
 0x1ce   : > { %v733_v23 = vadd.f32 %v1892_v21, %v396_v19  ;;  %749 = vst.msk [vmem:[#allocation2 + $0x20] sm:$0xff] %vm374_vm0, %v732_v22 }
 0x1d0   : > { %750 = vst.msk [vmem:[#allocation2 + $0x28] sm:$0xff] %vm374_vm0, %v733_v23  ;;  %v1893_v24 = vpop.f32.mrb[12].mxu0  ;;  %v1134_v23 = vsel %vm783_vm1, %v1129_v20, 0  ;;  %v1812_v20 = vld [vmem:[#allocation9 + $0x3] ss:$0 sm:$0xff] }
 0x1d1   : > { %v1894_v26 = vpop.f32.mrb[13].mxu0 }
 0x1d2   : > { %2000 = vmatmul.mubr.msk.bf16.vlgmr.msra.gmra.mrb[4].mxu1 %vm374_vm0, %v954_v56  ;;  %v1895_v27 = vadd.f32 %v1894_v26, %v1893_v24  ;;  %v1896_v28 = vpop.f32.mrb[14].mxu0  ;;  %v766_v24 = vld [vmem:[#allocation2 + $0x10] sm:$0xff]  ;;  %v1317_v26 = vld [vmem:[#allocation8 + $0xc] sm:$0xf] }
 0x1d3   : > { %2004 = vmatpush3.bf16.msra.mxu1 %v2251_v55  ;;  %2019 = vmatprep.mubr.msk.bf16.mxu1 %vm2566_vm2, %v2565_v18  ;;  %v1897_v30 = vpop.f32.mrb[15].mxu0 }
 0x1d4   : > { %2005 = vmatprep.subr.bf16.mxu1 %v2565_v18  ;;  %v734_v31 = vadd.f32 %v1895_v27, %v397_v25  ;;  %v1898_v32 = vadd.f32 %v1897_v30, %v1896_v28  ;;  %v767_v25 = vld [vmem:[#allocation2 + $0x18] sm:$0xff]  ;;  %v1328_v28 = vsel %vm783_vm1, %v1317_v26, 0 }
 0x1d5   : > { %v775_v27 = vpack.c.bf16 %v767_v25, %v766_v24  ;;  %v1813_v24 = vld [vmem:[#allocation11 + $0x3] ss:$0 sm:$0xff] }
 0x1d6   : > { %751 = vst.msk [vmem:[#allocation2 + $0x30] sm:$0xff] %vm374_vm0, %v734_v31  ;;  %v735_v33 = vadd.f32 %v1898_v32, %v398_v29  ;;  %v768_v29 = vld [vmem:[#allocation2 + $0x20] sm:$0xff] }
 0x1d7   : > { %2006 = vmatpush3.bf16.msra.mxu1 %v2253_v57  ;;  %v769_v30 = vld [vmem:[#allocation2 + $0x28] sm:$0xff] }
 0x1d8   : > { %2007 = vmatprep.subr.bf16.mxu1 %v2565_v18  ;;  %752 = vst.msk [vmem:[#allocation2 + $0x38] sm:$0xff] %vm374_vm0, %v735_v33  ;;  %v1899_v34 = vpop.f32.mrb[16].mxu0  ;;  %v776_v31 = vpack.c.bf16 %v769_v30, %v768_v29 }
 0x1d9   : > { %v1900_v36 = vpop.f32.mrb[17].mxu0 }
 0x1da   : > { %v1901_v37 = vadd.f32 %v1900_v36, %v1899_v34  ;;  %v1902_v38 = vpop.f32.mrb[18].mxu0 }
 0x1db   : > { %2008 = vmatpush3.bf16.msra.mxu1 %v2258_v58  ;;  %v1903_v40 = vpop.f32.mrb[19].mxu0 }
 0x1dc   : > { %2009 = vmatprep.subr.bf16.mxu1 %v2565_v18  ;;  %v736_v41 = vadd.f32 %v1901_v37, %v399_v35  ;;  %v1904_v42 = vadd.f32 %v1903_v40, %v1902_v38 }
 0x1dd   : > { %v770_v32 = vld [vmem:[#allocation2 + $0x30] sm:$0xff] }
 0x1de   : > { %753 = vst.msk [vmem:[#allocation2 + $0x40] sm:$0xff] %vm374_vm0, %v736_v41  ;;  %v737_v43 = vadd.f32 %v1904_v42, %v400_v39  ;;  %v405_v39 = vld [vmem:[#allocation2 + $0x70] sm:$0xff] }
 0x1df   : > { %2010 = vmatpush3.bf16.msra.mxu1 %v2260_v59  ;;  %v404_v59 = vld [vmem:[#allocation2 + $0x68] sm:$0xff]  ;;  %v771_v33 = vld [vmem:[#allocation2 + $0x38] sm:$0xff] }
 0x1e0   : > { %2011 = vmatprep.subr.bf16.mxu1 %v2565_v18  ;;  %754 = vst.msk [vmem:[#allocation2 + $0x48] sm:$0xff] %vm374_vm0, %v737_v43  ;;  %v1905_v44 = vpop.f32.mrb[20].mxu0  ;;  %v777_v34 = vpack.c.bf16 %v771_v33, %v770_v32  ;;  %v406_v43 = vld [vmem:[#allocation2 + $0x78] sm:$0xff] }
 0x1e1   : > { %v1906_v46 = vpop.f32.mrb[21].mxu0 }
 0x1e2   : > { %v1907_v47 = vadd.f32 %v1906_v46, %v1905_v44  ;;  %v1908_v48 = vpop.f32.mrb[22].mxu0 }
 0x1e3   : > { %2012 = vmatpush3.bf16.msra.mxu1 %v2265_v61  ;;  %v1909_v50 = vpop.f32.mrb[23].mxu0 }
 0x1e4   : > { %2013 = vmatprep.subr.bf16.mxu1 %v2565_v18  ;;  %v738_v51 = vadd.f32 %v1907_v47, %v401_v45  ;;  %v1910_v52 = vadd.f32 %v1909_v50, %v1908_v48  ;;  %v2272_v48 = vld [vmem:[#allocation12 + $0x88] sm:$0xff]   ;;  %v2274_v50 = vld [vmem:[#allocation12 + $0xc0] sm:$0xff]  }
 0x1e5   : > { %v772_v35 = vld [vmem:[#allocation2 + $0x40] sm:$0xff] }
 0x1e6   : > { %755 = vst.msk [vmem:[#allocation2 + $0x50] sm:$0xff] %vm374_vm0, %v738_v51  ;;  %v739_v56 = vadd.f32 %v1910_v52, %v402_v49  ;;  %v2273_v49 = vld [vmem:[#allocation12 + $0x90] sm:$0xff]   ;;  %v2275_v51 = vld [vmem:[#allocation12 + $0x98] sm:$0xff]   ;;  %v2276_v52 = vld [vmem:[#allocation12 + $0xc8] sm:$0xff]  }
 0x1e7   : > { %2014 = vmatpush3.bf16.msra.mxu1 %v2267_v0  ;;  %v1775_v0 = vld [vmem:[#allocation9] ss:$0 sm:$0xff]  ;;  %v773_v36 = vld [vmem:[#allocation2 + $0x48] sm:$0xff] }
 0x1e8   : > { %2015 = vmatprep.subr.bf16.mxu1 %v2565_v18  ;;  %v1911_v53 = vpop.f32.mrb[24].mxu0  ;;  %756 = vst.msk [vmem:[#allocation2 + $0x58] sm:$0xff] %vm374_vm0, %v739_v56  ;;  %v778_v37 = vpack.c.bf16 %v773_v36, %v772_v35  ;;  %v2280_v56 = vld [vmem:[#allocation12 + $0xd8] sm:$0xff]  }
 0x1e9   : > { %v1912_v55 = vpop.f32.mrb[25].mxu0 }
 0x1ea   : > { %v1913_v57 = vadd.f32 %v1912_v55, %v1911_v53  ;;  %v1914_v58 = vpop.f32.mrb[26].mxu0  ;;  %v2277_v53 = vld [vmem:[#allocation12 + $0xa0] sm:$0xff]   ;;  %v2279_v55 = vld [vmem:[#allocation12 + $0xa8] sm:$0xff]  }
 0x1eb   : > { %2016 = vmatpush3.bf16.msra.mxu1 %v2269_v9  ;;  %v1915_v60 = vpop.f32.mrb[27].mxu0  ;;  %v1786_v9 = vld [vmem:[#allocation9 + $0x1] ss:$0 sm:$0xff] }
 0x1ec   : > { %2017 = vmatprep.subr.bf16.mxu1 %v2565_v18  ;;  %v740_v61 = vadd.f32 %v1913_v57, %v403_v54  ;;  %v1916_v62 = vadd.f32 %v1915_v60, %v1914_v58  ;;  %v2278_v54 = vld [vmem:[#allocation12 + $0xd0] sm:$0xff]   ;;  %v2282_v58 = vld [vmem:[#allocation12 + $0xe0] sm:$0xff]   ;;  %v2284_v60 = vld [vmem:[#allocation12 + $0xe8] sm:$0xff]  }
 0x1ed   : > { %v2281_v57 = vld [vmem:[#allocation12 + $0xb0] sm:$0xff]  }
 0x1ee   : > { %757 = vst.msk [vmem:[#allocation2 + $0x60] sm:$0xff] %vm374_vm0, %v740_v61  ;;  %v741_v63 = vadd.f32 %v1916_v62, %v404_v59  ;;  %v2283_v59 = vld [vmem:[#allocation12 + $0xb8] sm:$0xff]   ;;  %v2285_v61 = vld [vmem:[#allocation12 + $0xf0] sm:$0xff]  }
 0x1ef   : > { %2018 = vmatpush3.bf16.msra.mxu1 %v2270_v13  ;;  %v1787_v13 = vld [vmem:[#allocation11 + $0x1] ss:$0 sm:$0xff] }
 0x1f0   : > { %2023 = vmatprep.subr.bf16.mxu1 %v2565_v18  ;;  %758 = vst.msk [vmem:[#allocation2 + $0x68] sm:$0xff] %vm374_vm0, %v741_v63  ;;  %v1917_v38 = vpop.f32.mrb[28].mxu0  ;;  %v2286_v62 = vld [vmem:[#allocation12 + $0xf8] sm:$0xff]  }
 0x1f1   : > { %v1918_v40 = vpop.f32.mrb[29].mxu0 }
 0x1f2   : > { %v1919_v41 = vadd.f32 %v1918_v40, %v1917_v38  ;;  %v1920_v42 = vpop.f32.mrb[30].mxu0 }
 0x1f3   : > { %v1921_v44 = vpop.f32.mrb[31].mxu0 }
 0x1f4   : > { %v742_v45 = vadd.f32 %v1919_v41, %v405_v39  ;;  %v1922_v46 = vadd.f32 %v1921_v44, %v1920_v42 }
 0x1f6   : > { %759 = vst.msk [vmem:[#allocation2 + $0x70] sm:$0xff] %vm374_vm0, %v742_v45  ;;  %v743_v47 = vadd.f32 %v1922_v46, %v406_v43 }
 0x1f8   : > { %760 = vst.msk [vmem:[#allocation2 + $0x78] sm:$0xff] %vm374_vm0, %v743_v47 }
 0x29d   : > { %v821_v1 = vpop.f32.mrb[0].mxu1 }
 0x29e   : > { %v834_v3 = vmul.f32 %v1775_v0, %v821_v1  ;;  %v1975_v4 = vpop.f32.mrb[1].mxu1 }
 0x29f   : > { %v824_v5 = vpop.f32.mrb[2].mxu1 }
 0x2a0   : > { %v842_v6 = vadd.f32 %v1776_v2, %v834_v3  ;;  %v1976_v7 = vpop.f32.mrb[3].mxu1 }
 0x2a2   : > { %v843_v8 = vmax.f32 %v842_v6, 0.0 }
 0x2a4   : > { %v844_v11 = vpack.c.bf16 %v843_v8, %v843_v8 }
 0x2a5   : > { %v995_v12 = vpop.f32.mrb[4].mxu1 }
 0x2a6   : > { %v1009_v14 = vmul.f32 %v1786_v9, %v995_v12  ;;  %1994 = vmatmul.mubr.bf16.vlgmr.msra.gmra.mrb[32].mxu0 %v844_v11  ;;  %v2001_v15 = vpop.f32.mrb[5].mxu1  ;;  %v1797_v9 = vld [vmem:[#allocation9 + $0x2] ss:$0 sm:$0xff]  ;;  %v1798_v11 = vld [vmem:[#allocation11 + $0x2] ss:$0 sm:$0xff] }
 0x2a7   : > { %v998_v16 = vpop.f32.mrb[6].mxu1  ;;  %2030 = vmatpush3.bf16.msra.mxu0 %v2271_v10  ;;  %2045 = vmatprep.mubr.msk.bf16.mxu0 %vm2566_vm2, %v2565_v18 }
 0x2a8   : > { %v1018_v17 = vadd.f32 %v1787_v13, %v1009_v14  ;;  %v2002_v19 = vpop.f32.mrb[7].mxu1  ;;  %2031 = vmatprep.subr.bf16.mxu0 %v2565_v18 }
 0x2aa   : > { %v1019_v21 = vmax.f32 %v1018_v17, 0.0 }
 0x2ab   : > { %2032 = vmatpush3.bf16.msra.mxu0 %v2272_v48 }
 0x2ac   : > { %v1020_v22 = vpack.c.bf16 %v1019_v21, %v1019_v21  ;;  %2033 = vmatprep.subr.bf16.mxu0 %v2565_v18 }
 0x2ae   : > { %2020 = vmatmul.mubr.bf16.vlgmr.msra.gmra.mrb[8].mxu1 %v1020_v22 }
 0x2af   : > { %2024 = vmatpush3.bf16.msra.mxu1 %v1134_v23  ;;  %2025 = vmatprep.mubr.msk.bf16.mxu1 %vm2566_vm2, %v2565_v18 }
 0x2b0   : > { %2049 = vmatprep.subr.bf16.mxu1 %v2565_v18  ;;  %2034 = vmatpush3.bf16.msra.mxu0 %v2273_v49 }
 0x2b1   : > { %2035 = vmatprep.subr.bf16.mxu0 %v2565_v18 }
 0x2b4   : > { %2036 = vmatpush3.bf16.msra.mxu0 %v2275_v51 }
 0x2b5   : > { %2037 = vmatprep.subr.bf16.mxu0 %v2565_v18 }
 0x2b6   : > { %2026 = vmatmul.mubr.msk.bf16.vlgmr.msra.gmra.mrb[12].mxu1 %vm374_vm0, %v775_v27 }
 0x2b7   : > { %2050 = vmatpush3.bf16.msra.mxu1 %v1328_v28  ;;  %2051 = vmatprep.mubr.msk.bf16.mxu1 %vm2566_vm2, %v2565_v18 }
 0x2b8   : > { %2063 = vmatprep.subr.bf16.mxu1 %v2565_v18  ;;  %2038 = vmatpush3.bf16.msra.mxu0 %v2277_v53 }
 0x2b9   : > { %2039 = vmatprep.subr.bf16.mxu0 %v2565_v18 }
 0x2bc   : > { %2040 = vmatpush3.bf16.msra.mxu0 %v2279_v55  ;;  %v2567_v55 = vmov 0  }
 0x2bd   : > { %2041 = vmatprep.subr.bf16.mxu0 %v2565_v18  ;;  %1567 = vst [vmem:[%s3018_s29 + $0x24] sm:$0xf] %v2567_v55  ;;  %1568 = vst [vmem:[%s3018_s29 + $0x28] sm:$0xf] %v2567_v55 }
 0x2be   : > { %2052 = vmatmul.mubr.msk.bf16.vlgmr.msra.gmra.mrb[16].mxu1 %vm374_vm0, %v776_v31  ;;  %1569 = vst [vmem:[%s3018_s29 + $0x2c] sm:$0xf] %v2567_v55  ;;  %1570 = vst [vmem:[%s3018_s29 + $0x30] sm:$0xf] %v2567_v55 }
 0x2bf   : > { %2055 = vmatprep.mubr.msk.bf16.mxu1 %vm2566_vm2, %v2565_v18  ;;  %2064 = vmatpush3.bf16.msra.mxu1 %v2274_v50  ;;  %1571 = vst [vmem:[%s3018_s29 + $0x34] sm:$0xf] %v2567_v55  ;;  %1572 = vst [vmem:[%s3018_s29 + $0x38] sm:$0xf] %v2567_v55 }
 0x2c0   : > { %2065 = vmatprep.subr.bf16.mxu1 %v2565_v18  ;;  %2042 = vmatpush3.bf16.msra.mxu0 %v2281_v57  ;;  %1573 = vst [vmem:[%s3018_s29 + $0x3c] sm:$0xf] %v2567_v55 }
 0x2c1   : > { %2043 = vmatprep.subr.bf16.mxu0 %v2565_v18 }
 0x2c3   : > { %2066 = vmatpush3.bf16.msra.mxu1 %v2276_v52 }
 0x2c4   : > { %2067 = vmatprep.subr.bf16.mxu1 %v2565_v18  ;;  %2044 = vmatpush3.bf16.msra.mxu0 %v2283_v59 }
 0x2c6   : > { %2056 = vmatmul.mubr.msk.bf16.gmra.mrb[20].mxu1 %vm374_vm0, %v777_v34 }
 0x2c7   : > { %2059 = vmatprep.mubr.msk.bf16.mxu1 %vm2566_vm2, %v2565_v18  ;;  %2068 = vmatpush3.bf16.msra.mxu1 %v2278_v54 }
 0x2c8   : > { %2069 = vmatprep.subr.bf16.mxu1 %v2565_v18 }
 0x2cb   : > { %2070 = vmatpush3.bf16.msra.mxu1 %v2280_v56 }
 0x2cc   : > { %2071 = vmatprep.subr.bf16.mxu1 %v2565_v18 }
 0x2ce   : > { %2060 = vmatmul.mubr.msk.bf16.gmra.mrb[24].mxu1 %vm374_vm0, %v778_v37 }
 0x2cf   : > { %2079 = vmatprep.mubr.msk.bf16.mxu1 %vm2566_vm2, %v2565_v18  ;;  %2072 = vmatpush3.bf16.msra.mxu1 %v2282_v58 }
 0x2d0   : > { %2073 = vmatprep.subr.bf16.mxu1 %v2565_v18 }
 0x2d3   : > { %2074 = vmatpush3.bf16.msra.mxu1 %v2284_v60 }
 0x2d4   : > { %2075 = vmatprep.subr.bf16.mxu1 %v2565_v18 }
 0x2d7   : > { %2076 = vmatpush3.bf16.msra.mxu1 %v2285_v61 }
 0x2d8   : > { %2077 = vmatprep.subr.bf16.mxu1 %v2565_v18 }
 0x2db   : > { %2078 = vmatpush3.bf16.msra.mxu1 %v2286_v62 }
 0x379   : > { %v943_v63 = vpop.f32.mrb[32].mxu0 }
 0x37a   : > { %v949_v0 = vpack.c.bf16 %v943_v63, %v943_v63  ;;  %v1995_v1 = vpop.f32.mrb[33].mxu0 }
 0x37b   : > { %v946_v2 = vpop.f32.mrb[34].mxu0 }
 0x37c   : > { %950 = vst [vmem:[%s3018_s29] sm:$0xf] %v949_v0  ;;  %v1996_v3 = vpop.f32.mrb[35].mxu0 }
 0x381   : > { %v1120_v4 = vpop.f32.mrb[8].mxu1 }
 0x382   : > { %v1126_v5 = vpack.c.bf16 %v1120_v4, %v1120_v4  ;;  %v2021_v6 = vpop.f32.mrb[9].mxu1 }
 0x383   : > { %v1123_v7 = vpop.f32.mrb[10].mxu1 }
 0x384   : > { %1127 = vst [vmem:[%s3018_s29 + $0x4] sm:$0xf] %v1126_v5  ;;  %v2022_v8 = vpop.f32.mrb[11].mxu1 }
 0x389   : > { %v1170_v10 = vpop.f32.mrb[12].mxu1 }
 0x38a   : > { %v1185_v12 = vmul.f32 %v1797_v9, %v1170_v10  ;;  %v2027_v13 = vpop.f32.mrb[13].mxu1 }
 0x38b   : > { %v1173_v14 = vpop.f32.mrb[14].mxu1 }
 0x38c   : > { %v1195_v15 = vadd.f32 %v1798_v11, %v1185_v12  ;;  %v1186_v16 = vmul.f32 %v1797_v9, %v1173_v14  ;;  %v2028_v17 = vpop.f32.mrb[15].mxu1 }
 0x38e   : > { %v1196_v19 = vadd.f32 %v1798_v11, %v1186_v16  ;;  %v1197_v21 = vmax.f32 %v1195_v15, 0.0 }
 0x390   : > { %v1198_v22 = vmax.f32 %v1196_v19, 0.0 }
 0x391   : > { %v1364_v23 = vpop.f32.mrb[16].mxu1 }
 0x392   : > { %v1199_v25 = vpack.c.bf16 %v1198_v22, %v1197_v21  ;;  %v1394_v26 = vmul.f32 %v1812_v20, %v1364_v23  ;;  %v2053_v27 = vpop.f32.mrb[17].mxu1 }
 0x393   : > { %v1367_v28 = vpop.f32.mrb[18].mxu1 }
 0x394   : > { %v1407_v29 = vadd.f32 %v1813_v24, %v1394_v26  ;;  %v1395_v30 = vmul.f32 %v1812_v20, %v1367_v28  ;;  %2046 = vmatmul.mubr.bf16.vlgmr.msra.gmra.mrb[36].mxu0 %v1199_v25  ;;  %v2054_v31 = vpop.f32.mrb[19].mxu1 }
 0x396   : > { %v1408_v32 = vadd.f32 %v1813_v24, %v1395_v30  ;;  %v1412_v33 = vmax.f32 %v1407_v29, 0.0 }
 0x398   : > { %v1413_v34 = vmax.f32 %v1408_v32, 0.0 }
 0x399   : > { %v1372_v35 = vpop.f32.mrb[20].mxu1 }
 0x39a   : > { %v1417_v36 = vpack.c.bf16 %v1413_v34, %v1412_v33  ;;  %v1396_v37 = vmul.f32 %v1812_v20, %v1372_v35  ;;  %v2057_v38 = vpop.f32.mrb[21].mxu1 }
 0x39b   : > { %v1375_v39 = vpop.f32.mrb[22].mxu1 }
 0x39c   : > { %v1409_v40 = vadd.f32 %v1813_v24, %v1396_v37  ;;  %v1397_v41 = vmul.f32 %v1812_v20, %v1375_v39  ;;  %v2058_v42 = vpop.f32.mrb[23].mxu1  ;;  %2080 = vmatmul.mubr.bf16.vlgmr.msra.gmra.mrb[28].mxu1 %v1417_v36 }
 0x39d   : > { %2083 = vmatprep.mubr.msk.bf16.mxu1 %vm2566_vm2, %v2565_v18 }
 0x39e   : > { %v1410_v43 = vadd.f32 %v1813_v24, %v1397_v41  ;;  %v1414_v44 = vmax.f32 %v1409_v40, 0.0 }
 0x3a0   : > { %v1415_v45 = vmax.f32 %v1410_v43, 0.0 }
 0x3a1   : > { %v1380_v46 = vpop.f32.mrb[24].mxu1 }
 0x3a2   : > { %v1398_v47 = vmul.f32 %v1812_v20, %v1380_v46  ;;  %v2061_v48 = vpop.f32.mrb[25].mxu1  ;;  %v1418_v49 = vpack.c.bf16 %v1415_v45, %v1414_v44 }
 0x3a3   : > { %v1383_v50 = vpop.f32.mrb[26].mxu1 }
 0x3a4   : > { %v1411_v51 = vadd.f32 %v1813_v24, %v1398_v47  ;;  %v2062_v52 = vpop.f32.mrb[27].mxu1  ;;  %2084 = vmatmul.mubr.bf16.gmra.mrb[32].mxu1 %v1418_v49 }
 0x3a5   : > { %2087 = vmatprep.mubr.msk.bf16.mxu1 %vm2566_vm2, %v2565_v18 }
 0x3a6   : > { %v1416_v53 = vmax.f32 %v1411_v51, 0.0 }
 0x3a8   : > { %v1419_v54 = vpack.c.bf16 %v1416_v53, %v1416_v53 }
 0x3ac   : > { %2088 = vmatmul.mubr.bf16.gmra.mrb[36].mxu1 %v1419_v54 }
 0x467   : > { %v1299_v56 = vpop.f32.mrb[36].mxu0 }
 0x468   : > { %v2047_v57 = vpop.f32.mrb[37].mxu0 }
 0x469   : > { %v1302_v58 = vpop.f32.mrb[38].mxu0 }
 0x46a   : > { %v1844_v59 = vpack.c.bf16 %v1302_v58, %v1299_v56  ;;  %v2048_v18 = vpop.f32.mrb[39].mxu0 }
 0x46c   : > { %1856 = vst [vmem:[%s3018_s29 + $0x8] sm:$0xff] %v1844_v59  }
 0x46f   : > { %v1519_v60 = vpop.f32.mrb[28].mxu1 }
 0x470   : > { %v2081_v61 = vpop.f32.mrb[29].mxu1 }
 0x471   : > { %v1522_v62 = vpop.f32.mrb[30].mxu1 }
 0x472   : > { %v1849_v63 = vpack.c.bf16 %v1522_v62, %v1519_v60  ;;  %v2082_v0 = vpop.f32.mrb[31].mxu1 }
 0x474   : > { %1857 = vst [vmem:[%s3018_s29 + $0x10] sm:$0xff] %v1849_v63  }
 0x477   : > { %v1527_v1 = vpop.f32.mrb[32].mxu1 }
 0x478   : > { %v2085_v2 = vpop.f32.mrb[33].mxu1 }
 0x479   : > { %v1530_v3 = vpop.f32.mrb[34].mxu1 }
 0x47a   : > { %v1854_v4 = vpack.c.bf16 %v1530_v3, %v1527_v1  ;;  %v2086_v5 = vpop.f32.mrb[35].mxu1 }
 0x47c   : > { %1858 = vst [vmem:[%s3018_s29 + $0x18] sm:$0xff] %v1854_v4  }
 0x47f   : > { %v1535_v6 = vpop.f32.mrb[36].mxu1 }
 0x480   : > { %v1839_v7 = vpack.c.bf16 %v1535_v6, %v1535_v6  ;;  %v2089_v8 = vpop.f32.mrb[37].mxu1 }
 0x481   : > { %v1538_v9 = vpop.f32.mrb[38].mxu1 }
 0x482   : > { %1566 = vst [vmem:[%s3018_s29 + $0x20] sm:$0xf] %v1839_v7  ;;  %v2090_v10 = vpop.f32.mrb[39].mxu1 }
 0x483   : > { %2470 = shalt.err (!%p2467_p8)
}
 0x484   : > { %s2471_s15 = scalar_lea.hbm %s3041_s3, 1024  ;;  %s2475_s19 = scalar_lea.hbm %s3099_s6, 2048 }
 0x485   : > { %p2472_p3 = scmp.ne.s32.totalorder %s3041_s3, %s2471_s15  ;;  %p2476_p0 = scmp.lt.u32.totalorder %s3041_s3, %s3099_s6 }
 0x486   : > { %p2477_p1 = scmp.lt.u32.totalorder %s2475_s19, %s2471_s15  ;;  %p2479_p6 = scmp.lt.u32.totalorder %s2471_s15, %s3041_s3 }
 0x487   : > { %p2473_p12 = pnand %p2472_p3, %p3126_p5 }
 0x488   : > { %p2478_p7 = por %p2477_p1, %p2476_p0 }
 0x489   : > { %p2474_p13 = pneg %p2473_p12 }
 0x48a   : > { %p2480_p10 = por %p2479_p6, %p2478_p7 }
 0x48c   : > { %p2481_p11 = pnand %p2480_p10, %p2474_p13 }
 0x48e   : > { %2484 = shalt.err (!%p2481_p11)
}
 0x48f   : > { %s2569_s9 = smov 64   ;;  %s2570_s18 = smov 4  }
 0x490   : > { %2113 = dma.vmem_to_hbm [thread:$0]  (%p3126_p5), %s3043_s11, 1024, %s3041_s3, %s1575_s30, %s2569_s9, %s2569_s9, %s2570_s18  }
 0x491 PF: > { %s1603_s20 = sand.u32 1, %s2531_s21   ;;  %p3127_p2 = scmp.ne.s32.totalorder %s3122_s17, 0 }
 0x492   : > { %p3128_p4 = scmp.ge.s32.totalorder %s2551_s26, 2  ;;  %s1604_s27 = scalar_lea.sflag [#allocation5], %s1603_s20 }
 0x494   : > { %p2136_p9 = pnand %p3128_p4, %p3127_p2 }
 0x496   : > { %2526 = dma.done.wait (!%p2136_p9), %s1604_s27, 1024  }
 0x497   : > { %2528 = vsyncadd (!%p2136_p9), %s1604_s27, 4294966272  ;;  %s25_s26 = sadd.s32 1, %s2551_s26   ;;  %s3129_s21 = smov %s2535_s22 }
 0x498   : > { %p22_p8 = scmp.ge.s32.totalorder %s25_s26, 4   ;;  %s3130_s22 = smov %s2539_s23 }
 0x499   : > { %s3131_s23 = smov %s2810_s14  ;;  %s3132_s24 = smov %s2547_s25 }
 0x49a   : > { %s3133_s25 = smov %s3135_s16  ;;  %24 = sbr.rel (!%p22_p8) target bundleno = 12 (0xc), region = 130 }
 0x4a1   :  { %1609 = vsyncpa [#allocation4], 1 }
 0x4a2   :  { %1611 = vsyncpa [#allocation4 + $0x1], 1 }
 0x4a3   :  { %1612 = vsyncpa [#allocation7], 1 }
 0x4a4   :  { %1613 = vsyncpa [#allocation10], 1 }
 0x4a5   :  { %1614 = vsyncpa [#allocation13], 1 }
 0x4a6   :  { %1615 = vsyncpa [#allocation5], 1 }
 0x4a7   :  { %1617 = vsyncpa [#allocation5 + $0x1], 1 }

// kernel: forward.3
= control target key start
LH: loop header
LB: loop body
LE: loop exit
PB: predicated region body
PF: predicated region fallthrough
CT: control target
= control target key end

     0   :  { %s2923_s0 = inlined_call_operand.hbm [shape: bf16[2,256,8], index: 0, kind: input, shape index: {}]   ;;  %s2924_s1 = inlined_call_operand.hbm [shape: bf16[256,128], index: 1, kind: input, shape index: {}]   ;;  %s2925_s2 = inlined_call_operand.hbm [shape: bf16[2,128,128], index: 2, kind: input, shape index: {}]   ;;  %s2926_s3 = inlined_call_operand.hbm [shape: bf16[8,128], index: 3, kind: input, shape index: {}]   ;;  %s2927_s4 = inlined_call_operand.hbm [shape: f32[1,128], index: 4, kind: input, shape index: {}]   ;;  %s2928_s5 = inlined_call_operand.hbm [shape: f32[1,128], index: 5, kind: input, shape index: {}]   ;;  %s2929_s6 = inlined_call_operand.hbm [shape: bf16[2,256,128], index: 6, kind: output, shape index: {}]  }
   0x1   :  { %2950 = sst [smem:[#allocation25_spill]] %s2923_s0 }
   0x2   :  { %2951 = sst [smem:[#allocation26_spill]] %s2924_s1 }
   0x3   :  { %2952 = sst [smem:[#allocation27_spill]] %s2927_s4 }
   0x4   :  { %2953 = sst [smem:[#allocation28_spill]] %s2929_s6 }
   0x5   :  { %11 = vsyncpa [#allocation3], 0 }
   0x6   :  { %13 = vsyncpa [#allocation3 + $0x1], 0 }
   0x7   :  { %14 = vsyncpa [#allocation6], 0 }
   0x8   :  { %15 = vsyncpa [#allocation10], 0 }
   0x9   :  { %16 = vsyncpa [#allocation4], 0 }
   0xa   :  { %18 = vsyncpa [#allocation4 + $0x1], 0  ;;  %s2375_s21 = smov 0   ;;  %s2377_s22 = smov 0  }
   0xb   :  { %s2379_s23 = smov 0   ;;  %s2381_s24 = smov 0  }
   0xc   :  { %s2383_s25 = smov 0   ;;  %s2385_s26 = smov 0  }
   0xd LB: > { %2954 = sst [smem:[#allocation19_spill]] %s2307_s21  ;;  %s2406_s27 = sadd.s32 4294967295, %s2327_s26   ;;  %s2327_s26 = sphi %s2385_s26, %s24_s26   ;;  %s2323_s25 = sphi %s2383_s25, %s2998_s25   ;;  %s2319_s24 = sphi %s2381_s24, %s2997_s24   ;;  %s2315_s23 = sphi %s2379_s23, %s2993_s23   ;;  %s2311_s22 = sphi %s2377_s22, %s2996_s22   ;;  %s2307_s21 = sphi %s2375_s21, %s2995_s21  }
   0xe   : > { %2955 = sst [smem:[#allocation20_spill]] %s2315_s23  ;;  %s1503_s28 = sadd.s32 4294967294, %s2327_s26  }
   0xf   : > { %2956 = sst [smem:[#allocation21_spill]] %s2327_s26  ;;  %p58_p0 = scmp.ne.s32.totalorder %s2311_s22, %s2307_s21 }
  0x10   : > { %p2930_p1 = scmp.eq.s32.totalorder %s2406_s27, 0  ;;  %p205_p3 = scmp.eq.s32.totalorder %s1503_s28, 1 }
  0x11   : > { %p1504_p5 = scmp.ge.s32.totalorder %s2327_s26, 1  ;;  %p212_p7 = scmp.lt.s32.totalorder %s2327_s26, 3 }
  0x12   : > { %p2415_p4 = por %p2930_p1, %p58_p0  ;;  %p2420_p6 = por %p205_p3, %p58_p0 }
  0x13   : > { %p2425_p8 = pnand %p1504_p5, %p212_p7  ;;  %s2329_s8 = smov [#allocation5]  }
  0x14   : > { %s2957_s29 = scalar_select %p2415_p4, 1, 0 }
  0x15   : > { %s2958_s30 = scalar_select %p2420_p6, 1, 0 }
  0x16   : > { %s2960_s7 = scalar_select %p2425_p8, 1, 0 }
  0x17   : > { %2959 = sst [smem:[#allocation22_spill]] %s2958_s30  ;;  %s227_s9 = sshll.u32 %s2329_s8, 4  ;;  %s2429_s9 = int_to_ptr.vmem [resolvable:$true] %s227_s9 }
  0x18   : > { %p1927_p9 = pneg %p2425_p8  ;;  %s2330_s11 = smov [#allocation9]  }
  0x19   : > { %s252_s12 = sshll.u32 %s2330_s11, 4  ;;  %s2962_s1 = sld [smem:[#allocation26_spill]]  ;;  %s2440_s12 = int_to_ptr.vmem [resolvable:$true] %s252_s12 }
  0x1a   : > { %p2436_p11 = pnand %p1927_p9, %p2930_p1 }
  0x1c   : > { %s2961_s10 = scalar_select %p2436_p11, 1, 0 }
  0x1d   : > { %p2450_p13 = pneg %p2436_p11 }
  0x1f   : > { %s2057_s15 = scalar_lea.hbm %s2962_s1, 2048 }
  0x20   : > { %p2058_p12 = scmp.ne.s32.totalorder %s2962_s1, %s2057_s15  ;;  %p2064_p5 = scmp.lt.u32.totalorder %s2057_s15, %s2962_s1 }
  0x22   : > { %p2060_p0 = pnand %p2450_p13, %p2058_p12 }
  0x24   : > { %p2061_p3 = pneg %p2060_p0 }
  0x26   : > { %p2066_p7 = pnand %p2064_p5, %p2061_p3 }
  0x28   : > { %2069 = shalt.err (!%p2066_p7)
}
  0x29   : > { %s2070_s28 = scalar_lea.vmem %s2429_s9, 2048  ;;  %p2078_p2 = scmp.lt.s32.totalorder %s2429_s9, %s2429_s9 }
  0x2a   : > { %p2071_p9 = scmp.ne.s32.totalorder %s2429_s9, %s2070_s28  ;;  %p2079_p6 = scmp.lt.s32.totalorder %s2070_s28, %s2070_s28 }
  0x2c   : > { %p2073_p10 = pnand %p2071_p9, %p2450_p13  ;;  %p2080_p12 = por %p2079_p6, %p2078_p2 }
  0x2e   : > { %p2074_p1 = pneg %p2073_p10 }
  0x30   : > { %p2081_p0 = pnand %p2080_p12, %p2074_p1 }
  0x32   : > { %2084 = shalt.err (!%p2081_p0)
}
  0x33   : > { %s2932_s8 = smov 64   ;;  %s2934_s11 = smov 4  }
  0x34   : > { %1930 = dma.hbm_to_vmem [thread:$0]  (!%p2436_p11), %s2962_s1, 2048, %s2429_s9, [#allocation6], %s2932_s8, %s2932_s8, %s2934_s11  }
  0x35   : > { %s2964_s4 = sld [smem:[#allocation27_spill]] }
  0x3b   : > { %s2085_s17 = scalar_lea.hbm %s2964_s4, 16 }
  0x3c   : > { %p2086_p1 = scmp.ne.s32.totalorder %s2964_s4, %s2085_s17  ;;  %p2092_p10 = scmp.lt.u32.totalorder %s2085_s17, %s2964_s4 }
  0x3e   : > { %p2088_p2 = pnand %p2086_p1, %p2450_p13 }
  0x40   : > { %p2089_p6 = pneg %p2088_p2 }
  0x42   : > { %p2094_p3 = pnand %p2092_p10, %p2089_p6 }
  0x44   : > { %2097 = shalt.err (!%p2094_p3)
}
  0x45   : > { %s2098_s9 = scalar_lea.vmem %s2440_s12, 16  ;;  %s2105_s13 = scalar_lea.vmem %s2440_s12, 32 }
  0x46   : > { %p2099_p5 = scmp.ne.s32.totalorder %s2440_s12, %s2098_s9  ;;  %p2106_p12 = scmp.lt.s32.totalorder %s2440_s12, %s2440_s12 }
  0x47   : > { %p2107_p0 = scmp.lt.s32.totalorder %s2105_s13, %s2098_s9 }
  0x48   : > { %p2101_p7 = pnand %p2099_p5, %p2450_p13 }
  0x49   : > { %p2108_p1 = por %p2107_p0, %p2106_p12 }
  0x4a   : > { %p2102_p9 = pneg %p2101_p7 }
  0x4c   : > { %p2109_p2 = pnand %p2108_p1, %p2102_p9 }
  0x4e   : > { %2112 = shalt.err (!%p2109_p2)
}
  0x4f   : > { %1936 = dma.hbm_to_vmem [thread:$0]  (!%p2436_p11), %s2964_s4, 16, %s2440_s12, [#allocation10]  }
  0x50   : > { %s36_s15 = sadd.s32 1, %s2323_s25  ;;  %s45_s16 = sadd.s32 1, %s2315_s23 }
  0x51   : > { %p38_p6 = scmp.ge.s32.totalorder %s36_s15, 2  ;;  %p52_p10 = scmp.ne.s32.totalorder %s2315_s23, %s2311_s22 }
  0x52   : > { %p53_p3 = scmp.eq.s32.totalorder %s2327_s26, 0  ;;  %p1955_p5 = scmp.lt.s32.totalorder %s2327_s26, 2 }
  0x53   : > { %s3000_s15 = smov (%p38_p6, %s36_s15), 0  ;;  %p2966_p9 = scmp.eq.s32.totalorder %s2406_s27, 1 }
  0x54   : > { %2965 = sst [smem:[#allocation23_spill]] %s3000_s15  ;;  %p54_p7 = por %p53_p3, %p52_p10 }
  0x55   : > { %p2508_p12 = por %p2966_p9, %p52_p10  ;;  %s40_s19 = ssub.s32 %s2323_s25, %s3000_s15 }
  0x56   : > { %s274_s20 = sand.u32 1, %s2327_s26   ;;  %p43_p0 = scmp.eq.s32.totalorder %s40_s19, 0 }
  0x57   : > { %s2967_s17 = scalar_select %p2508_p12, 1, 0 }
  0x58   : > { %s276_s28 = sand.u32 1, %s2315_s23   ;;  %s1619_s12 = sshll.u32 %s2323_s25, 11 }
  0x59   : > { %s2518_s9 = scalar_select %p43_p0, %s2315_s23, %s45_s16  }
  0x5a   : > { %s1510_s13 = sshll.u32 %s276_s28, 7  ;;  %s2969_s0 = sld [smem:[#allocation25_spill]] }
  0x5b   : > { %2968 = sst [smem:[#allocation24_spill]] %s2518_s9  ;;  %p2525_p1 = pnand %p1955_p5, %p54_p7 }
  0x5c   : > { %s278_s19 = scalar_lea.vmem [#allocation2], %s1510_s13  ;;  %s2529_s16 = sshll.u32 %s276_s28, 6 }
  0x5d   : > { %s2970_s11 = scalar_select %p2525_p1, 1, 0 }
  0x5e   : > { %s287_s1 = sshll.u32 %s278_s19, 4  ;;  %s2533_s4 = scalar_lea.sflag [#allocation3], %s274_s20  ;;  %s2531_s1 = int_to_ptr.vmem [resolvable:$true] %s287_s1 }
  0x5f   : > { %p2946_p6 = pneg %p2525_p1 }
  0x60   : > { %s2523_s8 = scalar_lea.hbm %s2969_s0, %s1619_s12  ;;  %s2118_s15 = scalar_lea.hbm %s2969_s0, 4096 }
  0x61   : > { %s2113_s12 = scalar_lea.hbm %s2523_s8, 2048  ;;  %p2119_p5 = scmp.lt.u32.totalorder %s2523_s8, %s2969_s0 }
  0x62   : > { %p2114_p2 = scmp.ne.s32.totalorder %s2523_s8, %s2113_s12  ;;  %p2120_p7 = scmp.lt.u32.totalorder %s2118_s15, %s2113_s12 }
  0x63   : > { %p2122_p0 = scmp.lt.u32.totalorder %s2113_s12, %s2523_s8 }
  0x64   : > { %p2116_p10 = pnand %p2946_p6, %p2114_p2  ;;  %p2121_p9 = por %p2120_p7, %p2119_p5 }
  0x66   : > { %p2117_p3 = pneg %p2116_p10  ;;  %p2123_p12 = por %p2122_p0, %p2121_p9 }
  0x68   : > { %p2124_p4 = pnand %p2123_p12, %p2117_p3 }
  0x6a   : > { %2127 = shalt.err (!%p2124_p4)
}
  0x6b   : > { %s2128_s20 = scalar_lea.vmem %s2531_s1, 2048  ;;  %s2333_s28 = smov [#allocation2]  }
  0x6c   : > { %p2129_p2 = scmp.ne.s32.totalorder %s2531_s1, %s2128_s20  ;;  %s2133_s30 = sshll.u32 %s2333_s28, 4  ;;  %s2134_s30 = int_to_ptr.vmem [resolvable:$false] %s2133_s30 }
  0x6d   : > { %s2135_s14 = scalar_lea.vmem %s2134_s30, 4096  ;;  %p2136_p11 = scmp.lt.s32.totalorder %s2531_s1, %s2134_s30 }
  0x6e   : > { %p2131_p10 = pnand %p2129_p2, %p2946_p6  ;;  %p2137_p5 = scmp.lt.s32.totalorder %s2135_s14, %s2128_s20 }
  0x70   : > { %p2132_p8 = pneg %p2131_p10  ;;  %p2138_p7 = por %p2137_p5, %p2136_p11 }
  0x72   : > { %p2139_p9 = pnand %p2138_p7, %p2132_p8 }
  0x74   : > { %2142 = shalt.err (!%p2139_p9)
}
  0x75   : > { %s2971_s15 = smov 4   ;;  %s2972_s12 = smov 64  }
  0x76   : > { %1943 = dma.hbm_to_vmem [thread:$0]  (!%p2525_p1), %s2523_s8, 2048, %s2531_s1, %s2533_s4, %s2972_s12, %s2972_s12, %s2971_s15  }
  0x77   : > { %s301_s13 = scalar_lea.vmem [#allocation7], %s2529_s16  ;;  %s2334_s28 = smov [#allocation8]  }
  0x78   : > { %s2565_s19 = sshll.u32 %s301_s13, 4  ;;  %s241_s30 = sshll.u32 %s2334_s28, 4  ;;  %s242_s30 = int_to_ptr.vmem [resolvable:$true] %s241_s30  ;;  %s2610_s19 = int_to_ptr.vmem [resolvable:$true] %s2565_s19 }
  0x79   : > { %s2143_s0 = scalar_lea.hbm %s2926_s3, 64 }
  0x7a   : > { %p2144_p4 = scmp.ne.s32.totalorder %s2926_s3, %s2143_s0  ;;  %p2150_p12 = scmp.lt.u32.totalorder %s2143_s0, %s2926_s3 }
  0x7c   : > { %p2146_p8 = pnand %p2144_p4, %p2450_p13 }
  0x7e   : > { %p2147_p11 = pneg %p2146_p8 }
  0x80   : > { %p2152_p3 = pnand %p2150_p12, %p2147_p11 }
  0x82   : > { %2155 = shalt.err (!%p2152_p3)
}
  0x83   : > { %s2156_s1 = scalar_lea.vmem %s242_s30, 64  ;;  %p2164_p5 = scmp.lt.s32.totalorder %s242_s30, %s242_s30 }
  0x84   : > { %p2157_p0 = scmp.ne.s32.totalorder %s242_s30, %s2156_s1  ;;  %p2165_p7 = scmp.lt.s32.totalorder %s2156_s1, %s2156_s1 }
  0x86   : > { %p2159_p2 = pnand %p2157_p0, %p2450_p13  ;;  %p2166_p9 = por %p2165_p7, %p2164_p5 }
  0x88   : > { %p2160_p10 = pneg %p2159_p2 }
  0x8a   : > { %p2167_p6 = pnand %p2166_p9, %p2160_p10 }
  0x8c   : > { %2170 = shalt.err (!%p2167_p6)
}
  0x8d   : > { %p2973_p4 = scmp.ne.s32.totalorder %s2961_s10, 0  ;;  %s2335_s0 = smov [#allocation11]  }
  0x8e   : > { %s263_s21 = sshll.u32 %s2335_s0, 4  ;;  %s1620_s26 = sshll.u32 %s2323_s25, 10  ;;  %s264_s21 = int_to_ptr.vmem [resolvable:$true] %s263_s21 }
  0x8f   : > { %1933 = dma.hbm_to_vmem [thread:$0]  (!%p2973_p4), %s2926_s3, 64, %s242_s30, [#allocation6]  }
  0x90   : > { %s2589_s13 = scalar_lea.hbm %s2925_s2, %s1620_s26  ;;  %s2171_s14 = scalar_lea.hbm %s2928_s5, 16 }
  0x91   : > { %p2172_p6 = scmp.ne.s32.totalorder %s2928_s5, %s2171_s14  ;;  %p2178_p12 = scmp.lt.u32.totalorder %s2171_s14, %s2928_s5 }
  0x93   : > { %p2174_p8 = pnand %p2172_p6, %p2450_p13 }
  0x95   : > { %p2175_p11 = pneg %p2174_p8 }
  0x97   : > { %p2180_p3 = pnand %p2178_p12, %p2175_p11 }
  0x99   : > { %2183 = shalt.err (!%p2180_p3)
}
  0x9a   : > { %s2184_s8 = scalar_lea.vmem %s264_s21, 16  ;;  %s2191_s0 = scalar_lea.vmem %s264_s21, 32 }
  0x9b   : > { %p2185_p0 = scmp.ne.s32.totalorder %s264_s21, %s2184_s8  ;;  %p2192_p5 = scmp.lt.s32.totalorder %s264_s21, %s264_s21 }
  0x9c   : > { %p2193_p7 = scmp.lt.s32.totalorder %s2191_s0, %s2184_s8 }
  0x9d   : > { %p2187_p2 = pnand %p2185_p0, %p2450_p13 }
  0x9e   : > { %p2194_p9 = por %p2193_p7, %p2192_p5 }
  0x9f   : > { %p2188_p10 = pneg %p2187_p2 }
  0xa1   : > { %p2195_p1 = pnand %p2194_p9, %p2188_p10 }
  0xa3   : > { %2198 = shalt.err (!%p2195_p1)
}
  0xa4   : > { %1939 = dma.hbm_to_vmem [thread:$0]  (!%p2973_p4), %s2928_s5, 16, %s264_s21, [#allocation10]  }
  0xa5   : > { %s2199_s18 = scalar_lea.hbm %s2589_s13, 1024  ;;  %p2974_p6 = scmp.ne.s32.totalorder %s2970_s11, 0 }
  0xa6   : > { %p2200_p13 = scmp.ne.s32.totalorder %s2589_s13, %s2199_s18  ;;  %s2204_s16 = scalar_lea.hbm %s2925_s2, 2048 }
  0xa7   : > { %p2975_p8 = pneg %p2974_p6  ;;  %p2205_p12 = scmp.lt.u32.totalorder %s2589_s13, %s2925_s2 }
  0xa8   : > { %p2206_p3 = scmp.lt.u32.totalorder %s2204_s16, %s2199_s18  ;;  %p2208_p2 = scmp.lt.u32.totalorder %s2199_s18, %s2589_s13 }
  0xa9   : > { %p2202_p11 = pnand %p2200_p13, %p2975_p8 }
  0xaa   : > { %p2207_p0 = por %p2206_p3, %p2205_p12 }
  0xab   : > { %p2203_p1 = pneg %p2202_p11 }
  0xac   : > { %p2209_p4 = por %p2208_p2, %p2207_p0 }
  0xae   : > { %p2210_p10 = pnand %p2209_p4, %p2203_p1 }
  0xb0   : > { %2213 = shalt.err (!%p2210_p10)
}
  0xb1   : > { %s2214_s21 = scalar_lea.vmem %s2610_s19, 1024  ;;  %p2976_p7 = pmov %p2975_p8 }
  0xb2   : > { %p2215_p5 = scmp.ne.s32.totalorder %s2610_s19, %s2214_s21  ;;  %s2336_s14 = smov [#allocation7]  }
  0xb3   : > { %s2219_s1 = sshll.u32 %s2336_s14, 4  ;;  %s2220_s1 = int_to_ptr.vmem [resolvable:$false] %s2219_s1 }
  0xb4   : > { %p2217_p9 = pnand %p2215_p5, %p2976_p7  ;;  %s2221_s30 = scalar_lea.vmem %s2220_s1, 2048 }
  0xb5   : > { %p2222_p8 = scmp.lt.s32.totalorder %s2610_s19, %s2220_s1  ;;  %p2223_p11 = scmp.lt.s32.totalorder %s2221_s30, %s2214_s21 }
  0xb6   : > { %p2218_p13 = pneg %p2217_p9 }
  0xb7   : > { %p2224_p12 = por %p2223_p11, %p2222_p8 }
  0xb9   : > { %p2225_p3 = pnand %p2224_p12, %p2218_p13 }
  0xbb   : > { %2228 = shalt.err (!%p2225_p3)
}
  0xbc   : > { %1946 = dma.hbm_to_vmem [thread:$0]  (!%p2974_p6), %s2589_s13, 1024, %s2610_s19, %s2533_s4, %s2972_s12, %s2972_s12, %s2971_s15  }
  0xbd   : > { %p2977_p1 = scmp.ne.s32.totalorder %s2960_s7, 0 }
  0xbe   : > { %s322_s23 = sand.u32 (!%p2977_p1), 1, %s2406_s27   ;;  %s2643_s8 = sand.u32 (!%p2977_p1), 1, %s2311_s22  }
  0xbf   : > { %320 = sbr.rel (%p2977_p1) target bundleno = 540 (0x21c), region = 44  ;;  %s1517_s0 = sshll.u32 (!%p2977_p1), %s2643_s8, 7 }
  0xc0   : > { %s323_s11 = scalar_lea.sflag (!%p2977_p1), [#allocation3], %s322_s23  ;;  %s2648_s6 = scalar_lea.vmem (!%p2977_p1), [#allocation2], %s1517_s0 }
  0xc1   : > { %p2978_p0 = scmp.ne.s32.totalorder (!%p2977_p1), %s2957_s29, 0 }
  0xc6   : > { %2282 = dma.done.wait (%p2978_p0), %s323_s11, 2048  }
  0xc7   : > { %2284 = vsyncadd (%p2978_p0), %s323_s11, 4294965248  ;;  %p2979_p6 = scmp.eq.s32.totalorder %s2406_s27, 0 }
  0xc9   : > { %2286 = dma.done.wait (%p2979_p6), [#allocation6], 2048   ;;  %p2980_p2 = pmov %p2979_p6 }
  0xca   : > { %s1519_s4 = sshll.u32 %s2643_s8, 6 }
  0xcb   : > { %2288 = vsyncadd (%p2980_p2), [#allocation6], 4294965248  ;;  %s2659_s7 = scalar_lea.vmem [#allocation7], %s1519_s4 }
  0xcc   : > { %2290 = dma.done.wait (%p2978_p0), %s323_s11, 1024  }
  0xcd   : > { %2292 = vsyncadd (%p2978_p0), %s323_s11, 4294966272  ;;  %p2981_p4 = pmov %p2980_p2 }
  0xce   : > { %p2982_p10 = pmov %p2980_p2 }
  0xcf   : > { %2294 = dma.done.wait (%p2981_p4), [#allocation6], 64  }
  0xd0   : > { %2296 = vsyncadd (%p2982_p10), [#allocation6], 4294967232  ;;  %p2983_p5 = pmov %p2980_p2 }
  0xd1   : > { %p2984_p7 = pmov %p2980_p2 }
  0xd2   : > { %2298 = dma.done.wait (%p2983_p5), [#allocation10], 32  }
  0xd3   : > { %2300 = vsyncadd (%p2984_p7), [#allocation10], 4294967264  ;;  %v2017_v0 = vld [vmem:[%s2659_s7] sm:$0xff]   ;;  %v2018_v1 = vld [vmem:[%s2659_s7 + $0x8] sm:$0xff]   ;;  %vm904_vm0 = vcmask 1043456   ;;  %vm855_vm1 = vcmask 64512  }
  0xd4   : > { %1790 = vmatprep.subr.bf16.mxu1 %v2017_v0  ;;  %v2019_v2 = vld [vmem:[%s2659_s7 + $0x10] sm:$0xff]   ;;  %v421_v3 = vld [vmem:[#allocation8] sm:$0xf]  ;;  %v2020_v4 = vld [vmem:[%s2659_s7 + $0x18] sm:$0xff]   ;;  %s2747_s27 = scalar_lea.vmem [#allocation12], %s1517_s0  ;;  %s1653_s29 = sshll.u32 %s2319_s24, 11 }
  0xd5   : > { %1791 = vmatpush3.bf16.msra.mxu1 %v2017_v0  ;;  %1904 = vmatprep.subr.msk.bf16.mxu0 %vm904_vm0, %v421_v3  ;;  %v906_v5 = vsel %vm904_vm0, %v421_v3, 0  ;;  %v2025_v6 = vld [vmem:[%s2648_s6] sm:$0xff]   ;;  %v2026_v7 = vld [vmem:[%s2648_s6 + $0x8] sm:$0xff]   ;;  %v2029_v10 = vld [vmem:[%s2648_s6 + $0x10] sm:$0xff]   ;;  %s1355_s15 = sshll.u32 %s2747_s27, 4  ;;  %s2985_s13 = sld [smem:[#allocation28_spill]]  ;;  %s2872_s15 = int_to_ptr.vmem [resolvable:$true] %s1355_s15 }
  0xd6   : > { %1792 = vmatprep.subr.bf16.mxu1 %v2018_v1  ;;  %1839 = vmatpush3.bf16.msra.mxu0 %v906_v5  ;;  %v2027_v8 = vld [vmem:[#allocation5] sm:$0xff]   ;;  %v2022_v11 = vld [vmem:[%s2659_s7 + $0x28] sm:$0xff]   ;;  %v2030_v12 = vld [vmem:[%s2648_s6 + $0x18] sm:$0xff]   ;;  %s1340_s24 = scalar_lea.sflag [#allocation4], %s2643_s8  ;;  %s2229_s18 = scalar_lea.vmem %s2872_s15, 2048 }
  0xd7   : > { %1840 = vmatprep.mubr.msk.bf16.mxu0 %vm855_vm1, %v2025_v6  ;;  %v2021_v9 = vld [vmem:[%s2659_s7 + $0x20] sm:$0xff]   ;;  %1806 = vmatprep.mubr.bf16.mxu1 %v2027_v8  ;;  %v2023_v14 = vld [vmem:[%s2659_s7 + $0x30] sm:$0xff]   ;;  %v2024_v15 = vld [vmem:[%s2659_s7 + $0x38] sm:$0xff]   ;;  %p2230_p9 = scmp.ne.s32.totalorder %s2872_s15, %s2229_s18  ;;  %p2986_p13 = scmp.ne.s32.totalorder %s2967_s17, 0 }
  0xd8   : > { %v2033_v13 = vld [vmem:[%s2648_s6 + $0x20] sm:$0xff]   ;;  %v2034_v16 = vld [vmem:[%s2648_s6 + $0x28] sm:$0xff]   ;;  %v2037_v17 = vld [vmem:[%s2648_s6 + $0x30] sm:$0xff]   ;;  %s2337_s9 = smov [#allocation12]  }
  0xd9   : > { %1793 = vmatpush3.bf16.msra.mxu1 %v2018_v1  ;;  %1841 = vmatmul.mubr.msk.bf16.vlgmr.msra.gmra.mrb[0].mxu0 %vm855_vm1, %v2026_v7  ;;  %v2028_v18 = vld [vmem:[#allocation5 + $0x8] sm:$0xff]   ;;  %v2031_v19 = vld [vmem:[#allocation5 + $0x10] sm:$0xff]   ;;  %v2038_v20 = vld [vmem:[%s2648_s6 + $0x38] sm:$0xff]   ;;  %p2231_p8 = pnand %p2230_p9, %p2986_p13  ;;  %s2233_s10 = sshll.u32 %s2337_s9, 4  ;;  %s2234_s10 = int_to_ptr.vmem [resolvable:$false] %s2233_s10 }
  0xda   : > { %1794 = vmatprep.subr.bf16.mxu1 %v2019_v2  ;;  %1844 = vmatprep.mubr.msk.bf16.mxu0 %vm855_vm1, %v2029_v10  ;;  %v2041_v21 = vld [vmem:[%s2648_s6 + $0x40] sm:$0xff]   ;;  %v2032_v22 = vld [vmem:[#allocation5 + $0x18] sm:$0xff]   ;;  %v2042_v24 = vld [vmem:[%s2648_s6 + $0x48] sm:$0xff]   ;;  %s2235_s16 = scalar_lea.vmem %s2234_s10, 4096  ;;  %p2236_p12 = scmp.lt.s32.totalorder %s2872_s15, %s2234_s10 }
  0xdb   : > { %v2035_v23 = vld [vmem:[#allocation5 + $0x20] sm:$0xff]   ;;  %v2045_v25 = vld [vmem:[%s2648_s6 + $0x50] sm:$0xff]   ;;  %v2036_v26 = vld [vmem:[#allocation5 + $0x28] sm:$0xff]   ;;  %s2870_s26 = scalar_lea.hbm %s2985_s13, %s1653_s29  ;;  %p2232_p11 = pneg %p2231_p8 }
  0xdc   : > { %v2039_v27 = vld [vmem:[#allocation5 + $0x30] sm:$0xff]   ;;  %v2046_v28 = vld [vmem:[%s2648_s6 + $0x58] sm:$0xff]   ;;  %v2049_v29 = vld [vmem:[%s2648_s6 + $0x60] sm:$0xff]   ;;  %p2237_p3 = scmp.lt.s32.totalorder %s2235_s16, %s2229_s18 }
  0xdd   : > { %1795 = vmatpush3.bf16.msra.mxu1 %v2019_v2  ;;  %v2040_v30 = vld [vmem:[#allocation5 + $0x38] sm:$0xff]   ;;  %v2043_v31 = vld [vmem:[#allocation5 + $0x40] sm:$0xff]   ;;  %v2050_v32 = vld [vmem:[%s2648_s6 + $0x68] sm:$0xff]  }
  0xde   : > { %1796 = vmatprep.subr.bf16.mxu1 %v2020_v4  ;;  %v2053_v33 = vld [vmem:[%s2648_s6 + $0x70] sm:$0xff]   ;;  %v2044_v34 = vld [vmem:[#allocation5 + $0x48] sm:$0xff]   ;;  %v2054_v36 = vld [vmem:[%s2648_s6 + $0x78] sm:$0xff]   ;;  %p2238_p1 = por %p2237_p3, %p2236_p12 }
  0xdf   : > { %v2047_v35 = vld [vmem:[#allocation5 + $0x50] sm:$0xff]   ;;  %v2048_v37 = vld [vmem:[#allocation5 + $0x58] sm:$0xff]   ;;  %v2051_v38 = vld [vmem:[#allocation5 + $0x60] sm:$0xff]  }
  0xe0   : > { %v2052_v39 = vld [vmem:[#allocation5 + $0x68] sm:$0xff]   ;;  %v2055_v40 = vld [vmem:[#allocation5 + $0x70] sm:$0xff]   ;;  %v2056_v41 = vld [vmem:[#allocation5 + $0x78] sm:$0xff]   ;;  %p2239_p0 = pnand %p2238_p1, %p2232_p11 }
  0xe1   : > { %1797 = vmatpush3.bf16.msra.mxu1 %v2020_v4  ;;  %1845 = vmatmul.mubr.msk.bf16.gmra.mrb[4].mxu0 %vm855_vm1, %v2030_v12  ;;  %v2717_v55 = vld [vmem:[#allocation9] ss:$0 sm:$0xff]  ;;  %v2719_v58 = vld [vmem:[#allocation11] ss:$0 sm:$0xff] }
  0xe2   : > { %1798 = vmatprep.subr.bf16.mxu1 %v2021_v9  ;;  %1848 = vmatprep.mubr.msk.bf16.mxu0 %vm855_vm1, %v2033_v13 }
  0xe5   : > { %1799 = vmatpush3.bf16.msra.mxu1 %v2021_v9 }
  0xe6   : > { %1800 = vmatprep.subr.bf16.mxu1 %v2022_v11 }
  0xe9   : > { %1801 = vmatpush3.bf16.msra.mxu1 %v2022_v11  ;;  %1849 = vmatmul.mubr.msk.bf16.gmra.mrb[8].mxu0 %vm855_vm1, %v2034_v16 }
  0xea   : > { %1802 = vmatprep.subr.bf16.mxu1 %v2023_v14  ;;  %1852 = vmatprep.mubr.msk.bf16.mxu0 %vm855_vm1, %v2037_v17 }
  0xed   : > { %1803 = vmatpush3.bf16.msra.mxu1 %v2023_v14 }
  0xee   : > { %1804 = vmatprep.subr.bf16.mxu1 %v2024_v15 }
  0xf1   : > { %1805 = vmatpush3.bf16.msra.mxu1 %v2024_v15  ;;  %1853 = vmatmul.mubr.msk.bf16.gmra.mrb[12].mxu0 %vm855_vm1, %v2038_v20 }
  0xf2   : > { %1856 = vmatprep.mubr.msk.bf16.mxu0 %vm855_vm1, %v2041_v21 }
  0xf4   : > { %1807 = vmatmul.mubr.bf16.vlgmr.msra.gmra.mrb[0].mxu1 %v2028_v18 }
  0xf5   : > { %1810 = vmatprep.mubr.bf16.mxu1 %v2031_v19 }
  0xf9   : > { %1857 = vmatmul.mubr.msk.bf16.gmra.mrb[16].mxu0 %vm855_vm1, %v2042_v24 }
  0xfa   : > { %1860 = vmatprep.mubr.msk.bf16.mxu0 %vm855_vm1, %v2045_v25 }
  0xfc   : > { %1811 = vmatmul.mubr.bf16.gmra.mrb[4].mxu1 %v2032_v22 }
  0xfd   : > { %1814 = vmatprep.mubr.bf16.mxu1 %v2035_v23 }
 0x101   : > { %1861 = vmatmul.mubr.msk.bf16.gmra.mrb[20].mxu0 %vm855_vm1, %v2046_v28 }
 0x102   : > { %1864 = vmatprep.mubr.msk.bf16.mxu0 %vm855_vm1, %v2049_v29 }
 0x104   : > { %1815 = vmatmul.mubr.bf16.gmra.mrb[8].mxu1 %v2036_v26 }
 0x105   : > { %1818 = vmatprep.mubr.bf16.mxu1 %v2039_v27 }
 0x109   : > { %1865 = vmatmul.mubr.msk.bf16.gmra.mrb[24].mxu0 %vm855_vm1, %v2050_v32 }
 0x10a   : > { %1868 = vmatprep.mubr.msk.bf16.mxu0 %vm855_vm1, %v2053_v33 }
 0x10c   : > { %1819 = vmatmul.mubr.bf16.gmra.mrb[12].mxu1 %v2040_v30 }
 0x10d   : > { %1822 = vmatprep.mubr.bf16.mxu1 %v2043_v31 }
 0x111   : > { %1869 = vmatmul.mubr.msk.bf16.gmra.mrb[28].mxu0 %vm855_vm1, %v2054_v36 }
 0x114   : > { %1823 = vmatmul.mubr.bf16.gmra.mrb[16].mxu1 %v2044_v34 }
 0x115   : > { %1826 = vmatprep.mubr.bf16.mxu1 %v2047_v35 }
 0x11c   : > { %1827 = vmatmul.mubr.bf16.gmra.mrb[20].mxu1 %v2048_v37 }
 0x11d   : > { %1830 = vmatprep.mubr.bf16.mxu1 %v2051_v38 }
 0x124   : > { %1831 = vmatmul.mubr.bf16.gmra.mrb[24].mxu1 %v2052_v39 }
 0x125   : > { %1834 = vmatprep.mubr.bf16.mxu1 %v2055_v40 }
 0x12c   : > { %1835 = vmatmul.mubr.bf16.gmra.mrb[28].mxu1 %v2056_v41 }
 0x1ac   : > { %v1842_v42 = vpop.f32.mrb[0].mxu0 }
 0x1ad   : > { %v942_v43 = vpop.f32.mrb[1].mxu0 }
 0x1ae   : > { %v1843_v44 = vpop.f32.mrb[2].mxu0 }
 0x1af   : > { %v945_v45 = vpop.f32.mrb[3].mxu0 }
 0x1b4   : > { %v1846_v46 = vpop.f32.mrb[4].mxu0 }
 0x1b5   : > { %v958_v47 = vpop.f32.mrb[5].mxu0 }
 0x1b6   : > { %v1847_v48 = vpop.f32.mrb[6].mxu0 }
 0x1b7   : > { %v961_v49 = vpop.f32.mrb[7].mxu0 }
 0x1bc   : > { %v1850_v50 = vpop.f32.mrb[8].mxu0 }
 0x1bd   : > { %v974_v51 = vpop.f32.mrb[9].mxu0 }
 0x1be   : > { %v2713_v52 = vpop.f32.mrb[10].mxu0 }
 0x1bf   : > { %v2715_v53 = vpop.f32.mrb[11].mxu0 }
 0x1c4   : > { %v2721_v61 = vpop.f32.mrb[12].mxu0 }
 0x1c5   : > { %v2724_v1 = vpop.f32.mrb[13].mxu0 }
 0x1c6   : > { %v2727_v4 = vpop.f32.mrb[14].mxu0 }
 0x1c7   : > { %v1808_v54 = vpop.f32.mrb[0].mxu1  ;;  %v2731_v7 = vpop.f32.mrb[15].mxu0 }
 0x1c8   : > { %v951_v56 = vadd.f32 %v1842_v42, %v1808_v54  ;;  %v648_v57 = vpop.f32.mrb[1].mxu1 }
 0x1c9   : > { %v943_v59 = vadd.f32 %v942_v43, %v648_v57  ;;  %v1809_v60 = vpop.f32.mrb[2].mxu1 }
 0x1ca   : > { %v1078_v62 = vmul.f32 %v2717_v55, %v951_v56  ;;  %v954_v63 = vadd.f32 %v1843_v44, %v1809_v60  ;;  %v651_v0 = vpop.f32.mrb[3].mxu1 }
 0x1cb   : > { %v1076_v2 = vmul.f32 %v2717_v55, %v943_v59  ;;  %v946_v3 = vadd.f32 %v945_v45, %v651_v0 }
 0x1cc   : > { %v1117_v5 = vadd.f32 %v2719_v58, %v1078_v62  ;;  %v1079_v6 = vmul.f32 %v2717_v55, %v954_v63  ;;  %v2737_v21 = vpop.f32.mrb[16].mxu0 }
 0x1cd   : > { %v1115_v8 = vadd.f32 %v2719_v58, %v1076_v2  ;;  %v1077_v9 = vmul.f32 %v2717_v55, %v946_v3  ;;  %v2740_v26 = vpop.f32.mrb[17].mxu0 }
 0x1ce   : > { %v1118_v10 = vadd.f32 %v2719_v58, %v1079_v6  ;;  %v1149_v13 = vmax.f32 %v1117_v5, 0.0  ;;  %v2743_v30 = vpop.f32.mrb[18].mxu0 }
 0x1cf   : > { %v1116_v11 = vadd.f32 %v2719_v58, %v1077_v9  ;;  %v1812_v12 = vpop.f32.mrb[4].mxu1  ;;  %v1147_v17 = vmax.f32 %v1115_v8, 0.0  ;;  %v2752_v33 = vpop.f32.mrb[19].mxu0 }
 0x1d0   : > { %v1150_v14 = vmax.f32 %v1118_v10, 0.0  ;;  %v967_v15 = vadd.f32 %v1846_v46, %v1812_v12  ;;  %v664_v16 = vpop.f32.mrb[5].mxu1 }
 0x1d1   : > { %v1148_v18 = vmax.f32 %v1116_v11, 0.0  ;;  %v959_v19 = vadd.f32 %v958_v47, %v664_v16  ;;  %v1813_v20 = vpop.f32.mrb[6].mxu1 }
 0x1d2   : > { %v1662_v22 = vpack.c.bf16 %v1150_v14, %v1149_v13  ;;  %v1082_v23 = vmul.f32 %v2717_v55, %v967_v15  ;;  %v970_v24 = vadd.f32 %v1847_v48, %v1813_v20  ;;  %v667_v25 = vpop.f32.mrb[7].mxu1 }
 0x1d3   : > { %v1657_v27 = vpack.c.bf16 %v1148_v18, %v1147_v17  ;;  %v1080_v28 = vmul.f32 %v2717_v55, %v959_v19  ;;  %v962_v29 = vadd.f32 %v961_v49, %v667_v25 }
 0x1d4   : > { %1734 = vst [vmem:[%s2747_s27 + $0x8] sm:$0xff] %v1662_v22   ;;  %v1121_v31 = vadd.f32 %v2719_v58, %v1082_v23  ;;  %v1083_v32 = vmul.f32 %v2717_v55, %v970_v24  ;;  %v2759_v47 = vpop.f32.mrb[20].mxu0 }
 0x1d5   : > { %1658 = vst [vmem:[%s2747_s27] sm:$0xff] %v1657_v27   ;;  %v1119_v34 = vadd.f32 %v2719_v58, %v1080_v28  ;;  %v1081_v35 = vmul.f32 %v2717_v55, %v962_v29  ;;  %v2763_v57 = vpop.f32.mrb[21].mxu0 }
 0x1d6   : > { %v1122_v36 = vadd.f32 %v2719_v58, %v1083_v32  ;;  %v1153_v39 = vmax.f32 %v1121_v31, 0.0  ;;  %v2767_v62 = vpop.f32.mrb[22].mxu0 }
 0x1d7   : > { %v1120_v37 = vadd.f32 %v2719_v58, %v1081_v35  ;;  %v1816_v38 = vpop.f32.mrb[8].mxu1  ;;  %v1151_v43 = vmax.f32 %v1119_v34, 0.0  ;;  %v2772_v0 = vpop.f32.mrb[23].mxu0 }
 0x1d8   : > { %v1154_v40 = vmax.f32 %v1122_v36, 0.0  ;;  %v983_v41 = vadd.f32 %v1850_v50, %v1816_v38  ;;  %v680_v42 = vpop.f32.mrb[9].mxu1 }
 0x1d9   : > { %v1152_v44 = vmax.f32 %v1120_v37, 0.0  ;;  %v975_v45 = vadd.f32 %v974_v51, %v680_v42  ;;  %v1817_v46 = vpop.f32.mrb[10].mxu1 }
 0x1da   : > { %v1672_v48 = vpack.c.bf16 %v1154_v40, %v1153_v39  ;;  %v1086_v49 = vmul.f32 %v2717_v55, %v983_v41  ;;  %v986_v54 = vadd.f32 %v2713_v52, %v1817_v46  ;;  %v683_v56 = vpop.f32.mrb[11].mxu1 }
 0x1db   : > { %v1667_v59 = vpack.c.bf16 %v1152_v44, %v1151_v43  ;;  %v1084_v50 = vmul.f32 %v2717_v55, %v975_v45  ;;  %v978_v60 = vadd.f32 %v2715_v53, %v683_v56 }
 0x1dc   : > { %1736 = vst [vmem:[%s2747_s27 + $0x18] sm:$0xff] %v1672_v48   ;;  %v1125_v51 = vadd.f32 %v2719_v58, %v1086_v49  ;;  %v1087_v63 = vmul.f32 %v2717_v55, %v986_v54  ;;  %v2781_v15 = vpop.f32.mrb[24].mxu0 }
 0x1dd   : > { %1735 = vst [vmem:[%s2747_s27 + $0x10] sm:$0xff] %v1667_v59   ;;  %v1123_v52 = vadd.f32 %v2719_v58, %v1084_v50  ;;  %v1085_v2 = vmul.f32 %v2717_v55, %v978_v60  ;;  %v2785_v20 = vpop.f32.mrb[25].mxu0 }
 0x1de   : > { %v1126_v3 = vadd.f32 %v2719_v58, %v1087_v63  ;;  %v1157_v53 = vmax.f32 %v1125_v51, 0.0  ;;  %v2789_v24 = vpop.f32.mrb[26].mxu0 }
 0x1df   : > { %v1124_v5 = vadd.f32 %v2719_v58, %v1085_v2  ;;  %v1820_v6 = vpop.f32.mrb[12].mxu1  ;;  %v1155_v11 = vmax.f32 %v1123_v52, 0.0  ;;  %v2794_v27 = vpop.f32.mrb[27].mxu0 }
 0x1e0   : > { %v1158_v8 = vmax.f32 %v1126_v3, 0.0  ;;  %v999_v9 = vadd.f32 %v2721_v61, %v1820_v6  ;;  %v696_v10 = vpop.f32.mrb[13].mxu1 }
 0x1e1   : > { %v1156_v12 = vmax.f32 %v1124_v5, 0.0  ;;  %v991_v13 = vadd.f32 %v2724_v1, %v696_v10  ;;  %v1821_v14 = vpop.f32.mrb[14].mxu1 }
 0x1e2   : > { %v1682_v16 = vpack.c.bf16 %v1158_v8, %v1157_v53  ;;  %v1090_v17 = vmul.f32 %v2717_v55, %v999_v9  ;;  %v1002_v18 = vadd.f32 %v2727_v4, %v1821_v14  ;;  %v699_v19 = vpop.f32.mrb[15].mxu1 }
 0x1e3   : > { %v1677_v22 = vpack.c.bf16 %v1156_v12, %v1155_v11  ;;  %v1088_v61 = vmul.f32 %v2717_v55, %v991_v13  ;;  %v994_v23 = vadd.f32 %v2731_v7, %v699_v19 }
 0x1e4   : > { %1738 = vst [vmem:[%s2747_s27 + $0x28] sm:$0xff] %v1682_v16   ;;  %v1129_v1 = vadd.f32 %v2719_v58, %v1090_v17  ;;  %v1091_v25 = vmul.f32 %v2717_v55, %v1002_v18  ;;  %v2803_v41 = vpop.f32.mrb[28].mxu0 }
 0x1e5   : > { %1737 = vst [vmem:[%s2747_s27 + $0x20] sm:$0xff] %v1677_v22   ;;  %v1127_v4 = vadd.f32 %v2719_v58, %v1088_v61  ;;  %v1089_v28 = vmul.f32 %v2717_v55, %v994_v23  ;;  %v2807_v46 = vpop.f32.mrb[29].mxu0 }
 0x1e6   : > { %v1130_v29 = vadd.f32 %v2719_v58, %v1091_v25  ;;  %v1161_v7 = vmax.f32 %v1129_v1, 0.0  ;;  %v2811_v54 = vpop.f32.mrb[30].mxu0 }
 0x1e7   : > { %v1128_v31 = vadd.f32 %v2719_v58, %v1089_v28  ;;  %v1824_v32 = vpop.f32.mrb[16].mxu1  ;;  %v1159_v37 = vmax.f32 %v1127_v4, 0.0  ;;  %v2816_v59 = vpop.f32.mrb[31].mxu0 }
 0x1e8   : > { %v1162_v34 = vmax.f32 %v1130_v29, 0.0  ;;  %v1015_v35 = vadd.f32 %v2737_v21, %v1824_v32  ;;  %v712_v36 = vpop.f32.mrb[17].mxu1 }
 0x1e9   : > { %v1160_v38 = vmax.f32 %v1128_v31, 0.0  ;;  %v1007_v39 = vadd.f32 %v2740_v26, %v712_v36  ;;  %v1825_v40 = vpop.f32.mrb[18].mxu1 }
 0x1ea   : > { %v1692_v42 = vpack.c.bf16 %v1162_v34, %v1161_v7  ;;  %v1094_v43 = vmul.f32 %v2717_v55, %v1015_v35  ;;  %v1018_v44 = vadd.f32 %v2743_v30, %v1825_v40  ;;  %v715_v45 = vpop.f32.mrb[19].mxu1 }
 0x1eb   : > { %v1687_v48 = vpack.c.bf16 %v1160_v38, %v1159_v37  ;;  %v1092_v21 = vmul.f32 %v2717_v55, %v1007_v39  ;;  %v1010_v49 = vadd.f32 %v2752_v33, %v715_v45 }
 0x1ec   : > { %1740 = vst [vmem:[%s2747_s27 + $0x38] sm:$0xff] %v1692_v42   ;;  %v1133_v26 = vadd.f32 %v2719_v58, %v1094_v43  ;;  %v1095_v56 = vmul.f32 %v2717_v55, %v1018_v44 }
 0x1ed   : > { %1739 = vst [vmem:[%s2747_s27 + $0x30] sm:$0xff] %v1687_v48   ;;  %v1131_v30 = vadd.f32 %v2719_v58, %v1092_v21  ;;  %v1093_v50 = vmul.f32 %v2717_v55, %v1010_v49 }
 0x1ee   : > { %v1134_v60 = vadd.f32 %v2719_v58, %v1095_v56  ;;  %v1165_v33 = vmax.f32 %v1133_v26, 0.0 }
 0x1ef   : > { %v1132_v51 = vadd.f32 %v2719_v58, %v1093_v50  ;;  %v1828_v63 = vpop.f32.mrb[20].mxu1  ;;  %v1163_v5 = vmax.f32 %v1131_v30, 0.0 }
 0x1f0   : > { %v1166_v52 = vmax.f32 %v1134_v60, 0.0  ;;  %v1031_v2 = vadd.f32 %v2759_v47, %v1828_v63  ;;  %v728_v3 = vpop.f32.mrb[21].mxu1 }
 0x1f1   : > { %v1164_v6 = vmax.f32 %v1132_v51, 0.0  ;;  %v1023_v53 = vadd.f32 %v2763_v57, %v728_v3  ;;  %v1829_v8 = vpop.f32.mrb[22].mxu1 }
 0x1f2   : > { %v1702_v9 = vpack.c.bf16 %v1166_v52, %v1165_v33  ;;  %v1098_v10 = vmul.f32 %v2717_v55, %v1031_v2  ;;  %v1034_v11 = vadd.f32 %v2767_v62, %v1829_v8  ;;  %v731_v12 = vpop.f32.mrb[23].mxu1 }
 0x1f3   : > { %v1697_v13 = vpack.c.bf16 %v1164_v6, %v1163_v5  ;;  %v1096_v14 = vmul.f32 %v2717_v55, %v1023_v53  ;;  %v1026_v16 = vadd.f32 %v2772_v0, %v731_v12 }
 0x1f4   : > { %1742 = vst [vmem:[%s2747_s27 + $0x48] sm:$0xff] %v1702_v9   ;;  %v1137_v47 = vadd.f32 %v2719_v58, %v1098_v10  ;;  %v1099_v17 = vmul.f32 %v2717_v55, %v1034_v11 }
 0x1f5   : > { %1741 = vst [vmem:[%s2747_s27 + $0x40] sm:$0xff] %v1697_v13   ;;  %v1135_v57 = vadd.f32 %v2719_v58, %v1096_v14  ;;  %v1097_v18 = vmul.f32 %v2717_v55, %v1026_v16 }
 0x1f6   : > { %v1138_v19 = vadd.f32 %v2719_v58, %v1099_v17  ;;  %v1169_v61 = vmax.f32 %v1137_v47, 0.0 }
 0x1f7   : > { %v1136_v62 = vadd.f32 %v2719_v58, %v1097_v18  ;;  %v1832_v22 = vpop.f32.mrb[24].mxu1  ;;  %v1167_v25 = vmax.f32 %v1135_v57, 0.0 }
 0x1f8   : > { %v1170_v23 = vmax.f32 %v1138_v19, 0.0  ;;  %v1047_v0 = vadd.f32 %v2781_v15, %v1832_v22  ;;  %v744_v1 = vpop.f32.mrb[25].mxu1 }
 0x1f9   : > { %v1168_v4 = vmax.f32 %v1136_v62, 0.0  ;;  %v1039_v28 = vadd.f32 %v2785_v20, %v744_v1  ;;  %v1833_v29 = vpop.f32.mrb[26].mxu1 }
 0x1fa   : > { %v1712_v31 = vpack.c.bf16 %v1170_v23, %v1169_v61  ;;  %v1102_v32 = vmul.f32 %v2717_v55, %v1047_v0  ;;  %v1050_v7 = vadd.f32 %v2789_v24, %v1833_v29  ;;  %v747_v34 = vpop.f32.mrb[27].mxu1 }
 0x1fb   : > { %v1707_v35 = vpack.c.bf16 %v1168_v4, %v1167_v25  ;;  %v1100_v36 = vmul.f32 %v2717_v55, %v1039_v28  ;;  %v1042_v37 = vadd.f32 %v2794_v27, %v747_v34 }
 0x1fc   : > { %1744 = vst [vmem:[%s2747_s27 + $0x58] sm:$0xff] %v1712_v31   ;;  %v1141_v15 = vadd.f32 %v2719_v58, %v1102_v32  ;;  %v1103_v38 = vmul.f32 %v2717_v55, %v1050_v7 }
 0x1fd   : > { %1743 = vst [vmem:[%s2747_s27 + $0x50] sm:$0xff] %v1707_v35   ;;  %v1139_v20 = vadd.f32 %v2719_v58, %v1100_v36  ;;  %v1101_v39 = vmul.f32 %v2717_v55, %v1042_v37 }
 0x1fe   : > { %v1142_v40 = vadd.f32 %v2719_v58, %v1103_v38  ;;  %v1173_v43 = vmax.f32 %v1141_v15, 0.0 }
 0x1ff   : > { %v1140_v24 = vadd.f32 %v2719_v58, %v1101_v39  ;;  %v1836_v42 = vpop.f32.mrb[28].mxu1  ;;  %v1171_v48 = vmax.f32 %v1139_v20, 0.0 }
 0x200   : > { %v1174_v44 = vmax.f32 %v1142_v40, 0.0  ;;  %v1063_v27 = vadd.f32 %v2803_v41, %v1836_v42  ;;  %v760_v45 = vpop.f32.mrb[29].mxu1 }
 0x201   : > { %v1172_v21 = vmax.f32 %v1140_v24, 0.0  ;;  %v1055_v49 = vadd.f32 %v2807_v46, %v760_v45  ;;  %v1837_v26 = vpop.f32.mrb[30].mxu1 }
 0x202   : > { %v1722_v56 = vpack.c.bf16 %v1174_v44, %v1173_v43  ;;  %v1106_v30 = vmul.f32 %v2717_v55, %v1063_v27  ;;  %v1066_v50 = vadd.f32 %v2811_v54, %v1837_v26  ;;  %v763_v60 = vpop.f32.mrb[31].mxu1 }
 0x203   : > { %v1717_v51 = vpack.c.bf16 %v1172_v21, %v1171_v48  ;;  %v1104_v63 = vmul.f32 %v2717_v55, %v1055_v49  ;;  %v1058_v41 = vadd.f32 %v2816_v59, %v763_v60 }
 0x204   : > { %1746 = vst [vmem:[%s2747_s27 + $0x68] sm:$0xff] %v1722_v56   ;;  %v1145_v33 = vadd.f32 %v2719_v58, %v1106_v30  ;;  %v1107_v52 = vmul.f32 %v2717_v55, %v1066_v50 }
 0x205   : > { %1745 = vst [vmem:[%s2747_s27 + $0x60] sm:$0xff] %v1717_v51   ;;  %v1143_v46 = vadd.f32 %v2719_v58, %v1104_v63  ;;  %v1105_v2 = vmul.f32 %v2717_v55, %v1058_v41 }
 0x206   : > { %v1146_v54 = vadd.f32 %v2719_v58, %v1107_v52  ;;  %v1177_v59 = vmax.f32 %v1145_v33, 0.0 }
 0x207   : > { %v1144_v3 = vadd.f32 %v2719_v58, %v1105_v2  ;;  %v1175_v6 = vmax.f32 %v1143_v46, 0.0 }
 0x208   : > { %v1178_v5 = vmax.f32 %v1146_v54, 0.0 }
 0x209   : > { %v1176_v53 = vmax.f32 %v1144_v3, 0.0 }
 0x20a   : > { %v1732_v8 = vpack.c.bf16 %v1178_v5, %v1177_v59 }
 0x20b   : > { %v1727_v55 = vpack.c.bf16 %v1176_v53, %v1175_v6 }
 0x20c   : > { %1748 = vst [vmem:[%s2747_s27 + $0x78] sm:$0xff] %v1732_v8  }
 0x20d   : > { %1747 = vst [vmem:[%s2747_s27 + $0x70] sm:$0xff] %v1727_v55  }
 0x20e   : > { %2242 = shalt.err (!%p2239_p0)
}
 0x20f   : > { %s2243_s28 = scalar_lea.hbm %s2870_s26, 2048  ;;  %s2247_s14 = scalar_lea.hbm %s2985_s13, 4096 }
 0x210   : > { %p2244_p6 = scmp.ne.s32.totalorder %s2870_s26, %s2243_s28  ;;  %p2248_p10 = scmp.lt.u32.totalorder %s2870_s26, %s2985_s13 }
 0x211   : > { %p2249_p5 = scmp.lt.u32.totalorder %s2247_s14, %s2243_s28  ;;  %p2251_p9 = scmp.lt.u32.totalorder %s2243_s28, %s2870_s26 }
 0x212   : > { %p2245_p2 = pnand %p2244_p6, %p2986_p13 }
 0x213   : > { %p2250_p7 = por %p2249_p5, %p2248_p10 }
 0x214   : > { %p2246_p4 = pneg %p2245_p2 }
 0x215   : > { %p2252_p8 = por %p2251_p9, %p2250_p7 }
 0x217   : > { %p2253_p11 = pnand %p2252_p8, %p2246_p4 }
 0x219   : > { %2256 = shalt.err (!%p2253_p11)
}
 0x21a   : > { %s2338_s23 = smov 64   ;;  %s2339_s0 = smov 4  }
 0x21b   : > { %1925 = dma.vmem_to_hbm [thread:$0]  (%p2986_p13), %s2872_s15, 2048, %s2870_s26, %s1340_s24, %s2338_s23, %s2338_s23, %s2339_s0  }
 0x21c PF: > { %s2987_s11 = sld [smem:[#allocation19_spill]]  ;;  %s2988_s6 = sld [smem:[#allocation22_spill]] }
 0x21d   : > { %s2989_s4 = sld [smem:[#allocation21_spill]] }
 0x222   : > { %s1370_s7 = sand.u32 1, %s2987_s11   ;;  %p2990_p12 = scmp.ne.s32.totalorder %s2988_s6, 0 }
 0x223   : > { %p2991_p3 = scmp.ge.s32.totalorder %s2989_s4, 2  ;;  %s1371_s27 = scalar_lea.sflag [#allocation4], %s1370_s7 }
 0x225   : > { %p1948_p1 = pnand %p2991_p3, %p2990_p12 }
 0x227   : > { %2302 = dma.done.wait (!%p1948_p1), %s1371_s27, 2048  }
 0x228   : > { %2304 = vsyncadd (!%p1948_p1), %s1371_s27, 4294965248  ;;  %s24_s26 = sadd.s32 1, %s2989_s4   ;;  %s2992_s29 = sld [smem:[#allocation20_spill]] }
 0x229   : > { %p21_p0 = scmp.ge.s32.totalorder %s24_s26, 4   ;;  %s2993_s23 = sld [smem:[#allocation24_spill]] }
 0x22a   : > { %s2994_s17 = sld [smem:[#allocation23_spill]]  ;;  %s2995_s21 = smov %s2311_s22 }
 0x22b   : > { %s2997_s24 = smov %s2323_s25  ;;  %23 = sbr.rel (!%p21_p0) target bundleno = 13 (0xd), region = 117 }
 0x22e   : > { %s2996_s22 = smov %s2992_s29 }
 0x230   : > { %s2998_s25 = smov %s2994_s17 }
 0x232   :  { %1376 = vsyncpa [#allocation3], 1 }
 0x233   :  { %1378 = vsyncpa [#allocation3 + $0x1], 1 }
 0x234   :  { %1379 = vsyncpa [#allocation6], 1 }
 0x235   :  { %1380 = vsyncpa [#allocation10], 1 }
 0x236   :  { %1381 = vsyncpa [#allocation4], 1 }
 0x237   :  { %1383 = vsyncpa [#allocation4 + $0x1], 1 }

</bundles_post_ra>
